<compile_context>
chip_gen: v6e
topology: v6e:2x2x1
jax: 0.10.0
libtpu: 0.0.40
codegen_flags: <defaults>
</compile_context>

<pallas_src>
import functools

import jax
import jax.numpy as jnp
import numpy as np
from jax import lax
from jax.experimental import pallas as pl
from jax.experimental.pallas import tpu as pltpu


# ----------------------------- Pallas kernel -------------------------------
def _fused_kernel(x_ref, dw1_ref, pw1_ref, b1_ref, dw2_ref, pw2_ref, b2_ref,
                  o_ref, xp1_ref, xp2_ref, *,
                  k, stride, pad, C_in, Bb,
                  Hp1, Wp1, Hs1, Ho1, Wf1,
                  Hp2, Wp2, Hs2, Ho2, Wf2):
    """Fused CSepConv forward for Bb batch elements per grid step.

    x_ref   : (Bb, H, W*C_in)          input slab (NHWC, W/C flattened on lanes)
    dw*_ref : (k*k, Wf*C_in)           depthwise weights, row = tap, W-tiled
    pw*_ref : (Wf*C_in, Wo*C)  bf16    grouped 1x1 as W-block matrix, BN scale folded
    b*_ref  : (1, Wo*C)                folded BN bias, W-tiled
    o_ref   : (Bb, Ho2, Wo2*C_out)     lane-dense output slab
    xp1_ref : (Bb*Hs1, Wp1*C_in) VMEM  zero-padded ReLU(x), stacked over batch
    xp2_ref : (Bb*Hs2, Wp2*C_in) VMEM  zero-padded ReLU(BN1(stage-1 out))
    """
    f32 = jnp.float32
    bf16 = jnp.bfloat16

    def padded_slab(rows, wp_cols):
        # Zero-pad a (R, W*C) value to (R+2*pad, Wp*C) in-register so the
        # scratch store starts at lane 0 and covers full rows (no separate
        # zero-fill of the slab, no masked lane-offset interior store).
        if pad:
            zc = jnp.zeros((rows.shape[0], pad * C_in), f32)
            rows = jnp.concatenate([zc, rows, zc], axis=1)
            zr = jnp.zeros((pad, wp_cols), f32)
            rows = jnp.concatenate([zr, rows, zr], axis=0)
        return rows

    def row_tap(val, start, n, step):
        if step == 1:
            return lax.slice_in_dim(val, start, start + n, axis=0)
        # TODO(synk): stride>1 sublane-strided slice untested at toy config.
        return lax.slice_in_dim(val, start, start + (n - 1) * step + 1,
                                stride=step, axis=0)

    def depthwise(xp_ref, dw_ref, Hs, Ho, Wf, step):
        # Hoisted dx lane-shifts: k shifted copies of the whole stacked slab
        # (k unaligned lane loads total), inner loop is sublane slices only.
        total_rows = Bb * Hs
        shifted = [xp_ref[pl.ds(0, total_rows), pl.ds(dx * C_in, Wf * C_in)]
                   for dx in range(k)]
        accs = []
        for b in range(Bb):
            acc = jnp.zeros((Ho, Wf * C_in), f32)
            for dy in range(k):
                for dx in range(k):
                    tap = row_tap(shifted[dx], b * Hs + dy, Ho, step)
                    acc = acc + tap * dw_ref[pl.ds(dy * k + dx, 1), :]
            accs.append(acc)
        return jnp.concatenate(accs, axis=0) if Bb > 1 else accs[0]

    # ---- stage 1: ReLU -> depthwise kxk (stride) -> grouped 1x1 (+BN1) ----
    xr = jnp.maximum(x_ref[...], 0.0).astype(f32)           # (Bb, H, W*C_in)
    for b in range(Bb):
        xp1_ref[pl.ds(b * Hs1, Hp1), pl.ds(0, Wp1 * C_in)] = padded_slab(
            xr[b], Wp1 * C_in)

    acc1 = depthwise(xp1_ref, dw1_ref, Hs1, Ho1, Wf1, stride)   # (Bb*Ho1, Wf1*C_in)
    # Grouped 1x1 + BN1 scale + W-stride subsampling on the MXU (bf16 operands,
    # f32 accumulation); M = Bb*Ho1.
    y1 = jnp.dot(acc1.astype(bf16), pw1_ref[...], preferred_element_type=f32)
    y1 = jnp.maximum(y1 + b1_ref[...], 0.0)          # BN1 shift + stage-2 ReLU

    # ---- stage 2 (stride 1): depthwise kxk -> grouped 1x1 (+BN2) ----
    for b in range(Bb):
        rows = lax.slice_in_dim(y1, b * Ho1, (b + 1) * Ho1, axis=0)
        xp2_ref[pl.ds(b * Hs2, Hp2), pl.ds(0, Wp2 * C_in)] = padded_slab(
            rows, Wp2 * C_in)

    acc2 = depthwise(xp2_ref, dw2_ref, Hs2, Ho2, Wf2, 1)        # (Bb*Ho2, Wf2*C_in)
    y2 = jnp.dot(acc2.astype(bf16), pw2_ref[...], preferred_element_type=f32)
    y2 = y2 + b2_ref[...]                                       # BN2 shift
    for b in range(Bb):
        o_ref[b] = lax.slice_in_dim(y2, b * Ho2, (b + 1) * Ho2,
                                    axis=0).astype(o_ref.dtype)


# --------------------------- host-side weight prep --------------------------
def _dw_tiled(dw, Wf):
    """(C,1,k,k) depthwise weights -> (k*k, Wf*C), tap-major, tiled over W."""
    C, _, k, _ = dw.shape
    d = jnp.transpose(dw[:, 0], (1, 2, 0)).reshape(k * k, C)   # (k*k, C)
    return jnp.tile(d, (1, Wf))


def _pw_block(pw, C_in, C_out, N, scale, Wf, Wo, stride):
    """Grouped 1x1 weights (C_out, C_in//N, 1, 1) -> (Wf*C_in, Wo*C_out).

    Block (wf, wo) equals the BN-scaled block-diagonal pointwise matrix iff
    wf == wo*stride, else zero.  Folds group structure, BN scale and the
    W-stride subsampling into a single MXU operand.
    """
    cing, coutg = C_in // N, C_out // N
    bd = jnp.zeros((C_in, C_out), jnp.float32)
    for g in range(N):
        blk = pw[g * coutg:(g + 1) * coutg, :, 0, 0].T          # (cing, coutg)
        bd = bd.at[g * cing:(g + 1) * cing, g * coutg:(g + 1) * coutg].set(blk)
    bd = bd * scale.reshape(1, C_out)                            # fold BN scale
    sel = jnp.zeros((Wf, Wo), jnp.float32)
    sel = sel.at[jnp.arange(Wo) * stride, jnp.arange(Wo)].set(1.0)
    return jnp.kron(sel, bd)


def _bias_tiled(bias, Wo):
    return jnp.tile(bias.reshape(-1), Wo).reshape(1, -1)


# ------------------------------- forward ------------------------------------
def csep_conv_forward(x_nchw, params, *, k, stride, padding, N, b_block=2):
    """CSepConv: ReLU->CSC(C_in,C_in,stride)->BN->ReLU->CSC(C_in,C_out,1)->BN."""
    B, C_in, H, W = x_nchw.shape
    C_out = params["pw2"].shape[0]
    Bb = min(b_block, B)
    assert B % Bb == 0, (B, Bb)

    def rup(v, m):
        return (v + m - 1) // m * m

    # Geometry.
    Hp1, Wp1 = H + 2 * padding, W + 2 * padding
    Ho1 = (Hp1 - k) // stride + 1
    Wo1 = (Wp1 - k) // stride + 1
    Wf1 = Wp1 - k + 1                 # stride-1 W positions computed in-kernel
    Hs1 = rup(Hp1, 8)                 # per-element sublane-aligned slot height
    Hp2, Wp2 = Ho1 + 2 * padding, Wo1 + 2 * padding
    Ho2, Wo2 = Hp2 - k + 1, Wp2 - k + 1
    Wf2 = Wp2 - k + 1                 # stage-2 stride is 1 -> Wf2 == Wo2
    Hs2 = rup(Hp2, 8)

    # Trace-time weight prep (all static shapes).  Pointwise operands in bf16
    # for the MXU; depthwise (VPU) weights and biases stay f32.
    s1, b1 = params["bn1"]
    s2, b2 = params["bn2"]
    dw1 = _dw_tiled(params["dw1"], Wf1)
    dw2 = _dw_tiled(params["dw2"], Wf2)
    pw1 = _pw_block(params["pw1"], C_in, C_in, N, s1, Wf1, Wo1,
                    stride).astype(jnp.bfloat16)
    pw2 = _pw_block(params["pw2"], C_in, C_out, N, s2, Wf2, Wo2,
                    1).astype(jnp.bfloat16)
    bias1 = _bias_tiled(b1, Wo1)
    bias2 = _bias_tiled(b2, Wo2)

    # NCHW -> NHWC -> lane-dense (B, H, W*C_in) slab (padding done in-kernel).
    x = jnp.transpose(x_nchw, (0, 2, 3, 1)).reshape(B, H, W * C_in)

    kernel = functools.partial(
        _fused_kernel, k=k, stride=stride, pad=padding, C_in=C_in, Bb=Bb,
        Hp1=Hp1, Wp1=Wp1, Hs1=Hs1, Ho1=Ho1, Wf1=Wf1,
        Hp2=Hp2, Wp2=Wp2, Hs2=Hs2, Ho2=Ho2, Wf2=Wf2)

    out = pl.pallas_call(
        kernel,
        out_shape=jax.ShapeDtypeStruct((B, Ho2, Wo2 * C_out), x_nchw.dtype),
        grid=(B // Bb,),
        in_specs=[
            pl.BlockSpec((Bb, H, W * C_in), lambda b: (b, 0, 0)),
            pl.BlockSpec((k * k, Wf1 * C_in), lambda b: (0, 0)),
            pl.BlockSpec((Wf1 * C_in, Wo1 * C_in), lambda b: (0, 0)),
            pl.BlockSpec((1, Wo1 * C_in), lambda b: (0, 0)),
            pl.BlockSpec((k * k, Wf2 * C_in), lambda b: (0, 0)),
            pl.BlockSpec((Wf2 * C_in, Wo2 * C_out), lambda b: (0, 0)),
            pl.BlockSpec((1, Wo2 * C_out), lambda b: (0, 0)),
        ],
        out_specs=pl.BlockSpec((Bb, Ho2, Wo2 * C_out), lambda b: (b, 0, 0)),
        scratch_shapes=[
            pltpu.VMEM((Bb * Hs1, Wp1 * C_in), jnp.float32),  # padded relu(x)
            pltpu.VMEM((Bb * Hs2, Wp2 * C_in), jnp.float32),  # padded stage-1 out
        ],
        compiler_params=pltpu.CompilerParams(dimension_semantics=("parallel",)),
    )(x, dw1, pw1, bias1, dw2, pw2, bias2)

    # (B, Ho2, Wo2*C_out) -> NCHW.
    return jnp.transpose(out.reshape(B, Ho2, Wo2, C_out), (0, 3, 1, 2))


# ------------------------------ parameters ----------------------------------
def init_params(key, C_in, C_out, k, N, eps=1e-5):
    ks = jax.random.split(key, 12)

    def dw(kk, C):
        return jax.random.normal(kk, (C, 1, k, k), jnp.float32) * (1.0 / (k * k))

    def pw(kk, ci, co):
        return jax.random.normal(kk, (co, ci // N, 1, 1), jnp.float32) * (
            1.0 / np.sqrt(ci // N))

    def bn(kg, kb, km, kv, C):
        gamma = 1.0 + 0.1 * jax.random.normal(kg, (C,), jnp.float32)
        beta = 0.1 * jax.random.normal(kb, (C,), jnp.float32)
        mean = 0.1 * jax.random.normal(km, (C,), jnp.float32)
        var = 1.0 + 0.1 * jax.random.uniform(kv, (C,), jnp.float32)
        scale = gamma / jnp.sqrt(var + eps)
        bias = beta - mean * scale
        return scale.reshape(1, C), bias.reshape(1, C)

    return dict(
        dw1=dw(ks[0], C_in),
        pw1=pw(ks[1], C_in, C_in),
        bn1=bn(ks[2], ks[3], ks[4], ks[5], C_in),
        dw2=dw(ks[6], C_in),
        pw2=pw(ks[7], C_in, C_out),
        bn2=bn(ks[8], ks[9], ks[10], ks[11], C_out),
    )


# ------------------------- pure-JAX reference ------------------------------
def reference_forward(x_nchw, params, *, k, stride, padding, N):
    x = jnp.transpose(x_nchw, (0, 2, 3, 1)).astype(jnp.float32)

    def stage(x, dw_t, pw_t, scale, bias, s):
        C = x.shape[-1]
        co = pw_t.shape[0]
        xr = jnp.maximum(x, 0.0)
        w_dw = jnp.transpose(dw_t[:, 0], (1, 2, 0)).reshape(k, k, 1, C)
        y = lax.conv_general_dilated(
            xr, w_dw, (s, s), [(padding, padding), (padding, padding)],
            dimension_numbers=("NHWC", "HWIO", "NHWC"), feature_group_count=C)
        w_pw = pw_t[:, :, 0, 0].T.reshape(1, 1, -1, co)
        y = lax.conv_general_dilated(
            y, w_pw, (1, 1), "VALID",
            dimension_numbers=("NHWC", "HWIO", "NHWC"), feature_group_count=N)
        return y * scale.reshape(1, 1, 1, -1) + bias.reshape(1, 1, 1, -1)

    y = stage(x, params["dw1"], params["pw1"], params["bn1"][0],
              params["bn1"][1], stride)
    z = stage(y, params["dw2"], params["pw2"], params["bn2"][0],
              params["bn2"][1], 1)
    return jnp.transpose(z, (0, 3, 1, 2))


# --------------------------------- main -------------------------------------
if __name__ == "__main__":
    key = jax.random.PRNGKey(0)
    kx, kp = jax.random.split(key)

    B, C_in, C_out, H, W = 2, 8, 16, 16, 16
    k, stride, padding, N = 3, 1, 1, 2

    x = jax.random.normal(kx, (B, C_in, H, W), jnp.float32)
    params = init_params(kp, C_in, C_out, k, N)

    out = csep_conv_forward(x, params, k=k, stride=stride, padding=padding, N=N)
    out = jax.block_until_ready(out)

    ref = reference_forward(x, params, k=k, stride=stride, padding=padding, N=N)
    assert out.shape == (B, C_out, H, W), out.shape
    # Tolerance loosened vs. the pure-f32 version because the pointwise
    # (grouped 1x1 + BN scale) matmuls now use bf16 MXU operands.
    np.testing.assert_allclose(np.asarray(out), np.asarray(ref),
                               atol=3e-2, rtol=3e-2)

    print("KERNEL_OK")
</pallas_src>

<mosaic_0001>
module attributes {stable_mosaic.version = 11 : i64} {
  func.func @_fused_kernel(%arg0: i32, %arg1: memref<2x16x128xf32, #tpu.memory_space<vmem>>, %arg2: memref<9x128xf32, #tpu.memory_space<vmem>>, %arg3: memref<128x128xbf16, #tpu.memory_space<vmem>>, %arg4: memref<1x128xf32, #tpu.memory_space<vmem>>, %arg5: memref<9x128xf32, #tpu.memory_space<vmem>>, %arg6: memref<128x256xbf16, #tpu.memory_space<vmem>>, %arg7: memref<1x256xf32, #tpu.memory_space<vmem>>, %arg8: memref<2x16x256xf32, #tpu.memory_space<vmem>>, %arg9: memref<48x144xf32, #tpu.memory_space<vmem>>, %arg10: memref<48x144xf32, #tpu.memory_space<vmem>>) attributes {dimension_semantics = [#tpu.dimension_semantics<parallel>], iteration_bounds = array<i64: 1>, scalar_prefetch = 0 : i64, scratch_operands = 2 : i64, tpu.core_type = #tpu.core_type<tc>, window_params = [{transform_indices = @transform_0, window_bounds = array<i64: 2, 16, 128>}, {pipeline_mode = #tpu.pipeline_mode<synchronous>, transform_indices = @transform_1, window_bounds = array<i64: 9, 128>}, {pipeline_mode = #tpu.pipeline_mode<synchronous>, transform_indices = @transform_2, window_bounds = array<i64: 128, 128>}, {pipeline_mode = #tpu.pipeline_mode<synchronous>, transform_indices = @transform_3, window_bounds = array<i64: 1, 128>}, {pipeline_mode = #tpu.pipeline_mode<synchronous>, transform_indices = @transform_4, window_bounds = array<i64: 9, 128>}, {pipeline_mode = #tpu.pipeline_mode<synchronous>, transform_indices = @transform_5, window_bounds = array<i64: 128, 256>}, {pipeline_mode = #tpu.pipeline_mode<synchronous>, transform_indices = @transform_6, window_bounds = array<i64: 1, 256>}, {transform_indices = @transform_7, window_bounds = array<i64: 2, 16, 256>}]} {
    %c0 = arith.constant 0 : index
    %c0_0 = arith.constant 0 : index
    %c0_1 = arith.constant 0 : index
    %0 = vector.load %arg1[%c0, %c0_0, %c0_1] : memref<2x16x128xf32, #tpu.memory_space<vmem>>, vector<2x16x128xf32>
    %cst = arith.constant 0.000000e+00 : f32
    %1 = vector.broadcast %cst : f32 to vector<2x16x128xf32>
    %2 = arith.maximumf %0, %1 : vector<2x16x128xf32>
    %3 = vector.extract_strided_slice %2 {offsets = [0, 0, 0], sizes = [1, 16, 128], strides = [1, 1, 1]} : vector<2x16x128xf32> to vector<1x16x128xf32>
    %4 = vector.shape_cast %3 : vector<1x16x128xf32> to vector<16x128xf32>
    %cst_2 = arith.constant 0.000000e+00 : f32
    %5 = vector.broadcast %cst_2 : f32 to vector<16x8xf32>
    %6 = tpu.concatenate %5, %4, %5 in 1 : vector<16x8xf32>, vector<16x128xf32>, vector<16x8xf32> -> vector<16x144xf32>
    %cst_3 = arith.constant 0.000000e+00 : f32
    %7 = vector.broadcast %cst_3 : f32 to vector<1x144xf32>
    %8 = tpu.concatenate %7, %6, %7 in 0 : vector<1x144xf32>, vector<16x144xf32>, vector<1x144xf32> -> vector<18x144xf32>
    %c0_4 = arith.constant 0 : index
    %c0_5 = arith.constant 0 : index
    %9 = vector.load %arg9[%c0_4, %c0_5] : memref<48x144xf32, #tpu.memory_space<vmem>>, vector<18x144xf32>
    tpu.vector_store %arg9[%c0_4, %c0_5], %8 {strides = array<i32>} : memref<48x144xf32, #tpu.memory_space<vmem>>, vector<18x144xf32>,
    %10 = vector.extract_strided_slice %2 {offsets = [1, 0, 0], sizes = [1, 16, 128], strides = [1, 1, 1]} : vector<2x16x128xf32> to vector<1x16x128xf32>
    %11 = vector.shape_cast %10 : vector<1x16x128xf32> to vector<16x128xf32>
    %cst_6 = arith.constant 0.000000e+00 : f32
    %12 = vector.broadcast %cst_6 : f32 to vector<16x8xf32>
    %13 = tpu.concatenate %12, %11, %12 in 1 : vector<16x8xf32>, vector<16x128xf32>, vector<16x8xf32> -> vector<16x144xf32>
    %cst_7 = arith.constant 0.000000e+00 : f32
    %14 = vector.broadcast %cst_7 : f32 to vector<1x144xf32>
    %15 = tpu.concatenate %14, %13, %14 in 0 : vector<1x144xf32>, vector<16x144xf32>, vector<1x144xf32> -> vector<18x144xf32>
    %c24 = arith.constant 24 : index
    %c0_8 = arith.constant 0 : index
    %16 = vector.load %arg9[%c24, %c0_8] : memref<48x144xf32, #tpu.memory_space<vmem>>, vector<18x144xf32>
    tpu.vector_store %arg9[%c24, %c0_8], %15 {strides = array<i32>} : memref<48x144xf32, #tpu.memory_space<vmem>>, vector<18x144xf32>,
    %c0_9 = arith.constant 0 : index
    %c0_10 = arith.constant 0 : index
    %17 = vector.load %arg9[%c0_9, %c0_10] : memref<48x144xf32, #tpu.memory_space<vmem>>, vector<48x128xf32>
    %c0_11 = arith.constant 0 : index
    %c8 = arith.constant 8 : index
    %18 = vector.load %arg9[%c0_11, %c8] : memref<48x144xf32, #tpu.memory_space<vmem>>, vector<48x128xf32>
    %c0_12 = arith.constant 0 : index
    %c16 = arith.constant 16 : index
    %19 = vector.load %arg9[%c0_12, %c16] : memref<48x144xf32, #tpu.memory_space<vmem>>, vector<48x128xf32>
    %cst_13 = arith.constant 0.000000e+00 : f32
    %20 = vector.broadcast %cst_13 : f32 to vector<16x128xf32>
    %21 = vector.extract_strided_slice %17 {offsets = [0, 0], sizes = [16, 128], strides = [1, 1]} : vector<48x128xf32> to vector<16x128xf32>
    %c0_14 = arith.constant 0 : index
    %c0_15 = arith.constant 0 : index
    %22 = vector.load %arg2[%c0_14, %c0_15] : memref<9x128xf32, #tpu.memory_space<vmem>>, vector<1x128xf32>
    %23 = vector.broadcast %22 : vector<1x128xf32> to vector<16x128xf32>
    %24 = arith.mulf %21, %23 : vector<16x128xf32>
    %25 = arith.addf %20, %24 : vector<16x128xf32>
    %26 = vector.extract_strided_slice %18 {offsets = [0, 0], sizes = [16, 128], strides = [1, 1]} : vector<48x128xf32> to vector<16x128xf32>
    %c1 = arith.constant 1 : index
    %c0_16 = arith.constant 0 : index
    %27 = vector.load %arg2[%c1, %c0_16] : memref<9x128xf32, #tpu.memory_space<vmem>>, vector<1x128xf32>
    %28 = vector.broadcast %27 : vector<1x128xf32> to vector<16x128xf32>
    %29 = arith.mulf %26, %28 : vector<16x128xf32>
    %30 = arith.addf %25, %29 : vector<16x128xf32>
    %31 = vector.extract_strided_slice %19 {offsets = [0, 0], sizes = [16, 128], strides = [1, 1]} : vector<48x128xf32> to vector<16x128xf32>
    %c2 = arith.constant 2 : index
    %c0_17 = arith.constant 0 : index
    %32 = vector.load %arg2[%c2, %c0_17] : memref<9x128xf32, #tpu.memory_space<vmem>>, vector<1x128xf32>
    %33 = vector.broadcast %32 : vector<1x128xf32> to vector<16x128xf32>
    %34 = arith.mulf %31, %33 : vector<16x128xf32>
    %35 = arith.addf %30, %34 : vector<16x128xf32>
    %36 = vector.extract_strided_slice %17 {offsets = [1, 0], sizes = [16, 128], strides = [1, 1]} : vector<48x128xf32> to vector<16x128xf32>
    %c3 = arith.constant 3 : index
    %c0_18 = arith.constant 0 : index
    %37 = vector.load %arg2[%c3, %c0_18] : memref<9x128xf32, #tpu.memory_space<vmem>>, vector<1x128xf32>
    %38 = vector.broadcast %37 : vector<1x128xf32> to vector<16x128xf32>
    %39 = arith.mulf %36, %38 : vector<16x128xf32>
    %40 = arith.addf %35, %39 : vector<16x128xf32>
    %41 = vector.extract_strided_slice %18 {offsets = [1, 0], sizes = [16, 128], strides = [1, 1]} : vector<48x128xf32> to vector<16x128xf32>
    %c4 = arith.constant 4 : index
    %c0_19 = arith.constant 0 : index
    %42 = vector.load %arg2[%c4, %c0_19] : memref<9x128xf32, #tpu.memory_space<vmem>>, vector<1x128xf32>
    %43 = vector.broadcast %42 : vector<1x128xf32> to vector<16x128xf32>
    %44 = arith.mulf %41, %43 : vector<16x128xf32>
    %45 = arith.addf %40, %44 : vector<16x128xf32>
    %46 = vector.extract_strided_slice %19 {offsets = [1, 0], sizes = [16, 128], strides = [1, 1]} : vector<48x128xf32> to vector<16x128xf32>
    %c5 = arith.constant 5 : index
    %c0_20 = arith.constant 0 : index
    %47 = vector.load %arg2[%c5, %c0_20] : memref<9x128xf32, #tpu.memory_space<vmem>>, vector<1x128xf32>
    %48 = vector.broadcast %47 : vector<1x128xf32> to vector<16x128xf32>
    %49 = arith.mulf %46, %48 : vector<16x128xf32>
    %50 = arith.addf %45, %49 : vector<16x128xf32>
    %51 = vector.extract_strided_slice %17 {offsets = [2, 0], sizes = [16, 128], strides = [1, 1]} : vector<48x128xf32> to vector<16x128xf32>
    %c6 = arith.constant 6 : index
    %c0_21 = arith.constant 0 : index
    %52 = vector.load %arg2[%c6, %c0_21] : memref<9x128xf32, #tpu.memory_space<vmem>>, vector<1x128xf32>
    %53 = vector.broadcast %52 : vector<1x128xf32> to vector<16x128xf32>
    %54 = arith.mulf %51, %53 : vector<16x128xf32>
    %55 = arith.addf %50, %54 : vector<16x128xf32>
    %56 = vector.extract_strided_slice %18 {offsets = [2, 0], sizes = [16, 128], strides = [1, 1]} : vector<48x128xf32> to vector<16x128xf32>
    %c7 = arith.constant 7 : index
    %c0_22 = arith.constant 0 : index
    %57 = vector.load %arg2[%c7, %c0_22] : memref<9x128xf32, #tpu.memory_space<vmem>>, vector<1x128xf32>
    %58 = vector.broadcast %57 : vector<1x128xf32> to vector<16x128xf32>
    %59 = arith.mulf %56, %58 : vector<16x128xf32>
    %60 = arith.addf %55, %59 : vector<16x128xf32>
    %61 = vector.extract_strided_slice %19 {offsets = [2, 0], sizes = [16, 128], strides = [1, 1]} : vector<48x128xf32> to vector<16x128xf32>
    %c8_23 = arith.constant 8 : index
    %c0_24 = arith.constant 0 : index
    %62 = vector.load %arg2[%c8_23, %c0_24] : memref<9x128xf32, #tpu.memory_space<vmem>>, vector<1x128xf32>
    %63 = vector.broadcast %62 : vector<1x128xf32> to vector<16x128xf32>
    %64 = arith.mulf %61, %63 : vector<16x128xf32>
    %65 = arith.addf %60, %64 : vector<16x128xf32>
    %cst_25 = arith.constant 0.000000e+00 : f32
    %66 = vector.broadcast %cst_25 : f32 to vector<16x128xf32>
    %67 = vector.extract_strided_slice %17 {offsets = [24, 0], sizes = [16, 128], strides = [1, 1]} : vector<48x128xf32> to vector<16x128xf32>
    %c0_26 = arith.constant 0 : index
    %c0_27 = arith.constant 0 : index
    %68 = vector.load %arg2[%c0_26, %c0_27] : memref<9x128xf32, #tpu.memory_space<vmem>>, vector<1x128xf32>
    %69 = vector.broadcast %68 : vector<1x128xf32> to vector<16x128xf32>
    %70 = arith.mulf %67, %69 : vector<16x128xf32>
    %71 = arith.addf %66, %70 : vector<16x128xf32>
    %72 = vector.extract_strided_slice %18 {offsets = [24, 0], sizes = [16, 128], strides = [1, 1]} : vector<48x128xf32> to vector<16x128xf32>
    %c1_28 = arith.constant 1 : index
    %c0_29 = arith.constant 0 : index
    %73 = vector.load %arg2[%c1_28, %c0_29] : memref<9x128xf32, #tpu.memory_space<vmem>>, vector<1x128xf32>
    %74 = vector.broadcast %73 : vector<1x128xf32> to vector<16x128xf32>
    %75 = arith.mulf %72, %74 : vector<16x128xf32>
    %76 = arith.addf %71, %75 : vector<16x128xf32>
    %77 = vector.extract_strided_slice %19 {offsets = [24, 0], sizes = [16, 128], strides = [1, 1]} : vector<48x128xf32> to vector<16x128xf32>
    %c2_30 = arith.constant 2 : index
    %c0_31 = arith.constant 0 : index
    %78 = vector.load %arg2[%c2_30, %c0_31] : memref<9x128xf32, #tpu.memory_space<vmem>>, vector<1x128xf32>
    %79 = vector.broadcast %78 : vector<1x128xf32> to vector<16x128xf32>
    %80 = arith.mulf %77, %79 : vector<16x128xf32>
    %81 = arith.addf %76, %80 : vector<16x128xf32>
    %82 = vector.extract_strided_slice %17 {offsets = [25, 0], sizes = [16, 128], strides = [1, 1]} : vector<48x128xf32> to vector<16x128xf32>
    %c3_32 = arith.constant 3 : index
    %c0_33 = arith.constant 0 : index
    %83 = vector.load %arg2[%c3_32, %c0_33] : memref<9x128xf32, #tpu.memory_space<vmem>>, vector<1x128xf32>
    %84 = vector.broadcast %83 : vector<1x128xf32> to vector<16x128xf32>
    %85 = arith.mulf %82, %84 : vector<16x128xf32>
    %86 = arith.addf %81, %85 : vector<16x128xf32>
    %87 = vector.extract_strided_slice %18 {offsets = [25, 0], sizes = [16, 128], strides = [1, 1]} : vector<48x128xf32> to vector<16x128xf32>
    %c4_34 = arith.constant 4 : index
    %c0_35 = arith.constant 0 : index
    %88 = vector.load %arg2[%c4_34, %c0_35] : memref<9x128xf32, #tpu.memory_space<vmem>>, vector<1x128xf32>
    %89 = vector.broadcast %88 : vector<1x128xf32> to vector<16x128xf32>
    %90 = arith.mulf %87, %89 : vector<16x128xf32>
    %91 = arith.addf %86, %90 : vector<16x128xf32>
    %92 = vector.extract_strided_slice %19 {offsets = [25, 0], sizes = [16, 128], strides = [1, 1]} : vector<48x128xf32> to vector<16x128xf32>
    %c5_36 = arith.constant 5 : index
    %c0_37 = arith.constant 0 : index
    %93 = vector.load %arg2[%c5_36, %c0_37] : memref<9x128xf32, #tpu.memory_space<vmem>>, vector<1x128xf32>
    %94 = vector.broadcast %93 : vector<1x128xf32> to vector<16x128xf32>
    %95 = arith.mulf %92, %94 : vector<16x128xf32>
    %96 = arith.addf %91, %95 : vector<16x128xf32>
    %97 = vector.extract_strided_slice %17 {offsets = [26, 0], sizes = [16, 128], strides = [1, 1]} : vector<48x128xf32> to vector<16x128xf32>
    %c6_38 = arith.constant 6 : index
    %c0_39 = arith.constant 0 : index
    %98 = vector.load %arg2[%c6_38, %c0_39] : memref<9x128xf32, #tpu.memory_space<vmem>>, vector<1x128xf32>
    %99 = vector.broadcast %98 : vector<1x128xf32> to vector<16x128xf32>
    %100 = arith.mulf %97, %99 : vector<16x128xf32>
    %101 = arith.addf %96, %100 : vector<16x128xf32>
    %102 = vector.extract_strided_slice %18 {offsets = [26, 0], sizes = [16, 128], strides = [1, 1]} : vector<48x128xf32> to vector<16x128xf32>
    %c7_40 = arith.constant 7 : index
    %c0_41 = arith.constant 0 : index
    %103 = vector.load %arg2[%c7_40, %c0_41] : memref<9x128xf32, #tpu.memory_space<vmem>>, vector<1x128xf32>
    %104 = vector.broadcast %103 : vector<1x128xf32> to vector<16x128xf32>
    %105 = arith.mulf %102, %104 : vector<16x128xf32>
    %106 = arith.addf %101, %105 : vector<16x128xf32>
    %107 = vector.extract_strided_slice %19 {offsets = [26, 0], sizes = [16, 128], strides = [1, 1]} : vector<48x128xf32> to vector<16x128xf32>
    %c8_42 = arith.constant 8 : index
    %c0_43 = arith.constant 0 : index
    %108 = vector.load %arg2[%c8_42, %c0_43] : memref<9x128xf32, #tpu.memory_space<vmem>>, vector<1x128xf32>
    %109 = vector.broadcast %108 : vector<1x128xf32> to vector<16x128xf32>
    %110 = arith.mulf %107, %109 : vector<16x128xf32>
    %111 = arith.addf %106, %110 : vector<16x128xf32>
    %112 = tpu.concatenate %65, %111 in 0 : vector<16x128xf32>, vector<16x128xf32> -> vector<32x128xf32>
    %113 = arith.truncf %112 : vector<32x128xf32> to vector<32x128xbf16>
    %c0_44 = arith.constant 0 : index
    %c0_45 = arith.constant 0 : index
    %114 = vector.load %arg3[%c0_44, %c0_45] : memref<128x128xbf16, #tpu.memory_space<vmem>>, vector<128x128xbf16>
    %cst_46 = arith.constant dense<0.000000e+00> : vector<32x128xf32>
    %115 = tpu.matmul %113, %114, %cst_46 {dimension_numbers = #tpu.dot_dimension_numbers<[1], [0], [0], [1], [0, 0, 1, 1], [], []>} : vector<32x128xbf16>, vector<128x128xbf16>, vector<32x128xf32> -> vector<32x128xf32>
    %c0_47 = arith.constant 0 : index
    %c0_48 = arith.constant 0 : index
    %116 = vector.load %arg4[%c0_47, %c0_48] : memref<1x128xf32, #tpu.memory_space<vmem>>, vector<1x128xf32>
    %117 = vector.broadcast %116 : vector<1x128xf32> to vector<32x128xf32>
    %118 = arith.addf %115, %117 : vector<32x128xf32>
    %cst_49 = arith.constant 0.000000e+00 : f32
    %119 = vector.broadcast %cst_49 : f32 to vector<32x128xf32>
    %120 = arith.maximumf %118, %119 : vector<32x128xf32>
    %121 = vector.extract_strided_slice %120 {offsets = [0, 0], sizes = [16, 128], strides = [1, 1]} : vector<32x128xf32> to vector<16x128xf32>
    %cst_50 = arith.constant 0.000000e+00 : f32
    %122 = vector.broadcast %cst_50 : f32 to vector<16x8xf32>
    %123 = tpu.concatenate %122, %121, %122 in 1 : vector<16x8xf32>, vector<16x128xf32>, vector<16x8xf32> -> vector<16x144xf32>
    %cst_51 = arith.constant 0.000000e+00 : f32
    %124 = vector.broadcast %cst_51 : f32 to vector<1x144xf32>
    %125 = tpu.concatenate %124, %123, %124 in 0 : vector<1x144xf32>, vector<16x144xf32>, vector<1x144xf32> -> vector<18x144xf32>
    %c0_52 = arith.constant 0 : index
    %c0_53 = arith.constant 0 : index
    %126 = vector.load %arg10[%c0_52, %c0_53] : memref<48x144xf32, #tpu.memory_space<vmem>>, vector<18x144xf32>
    tpu.vector_store %arg10[%c0_52, %c0_53], %125 {strides = array<i32>} : memref<48x144xf32, #tpu.memory_space<vmem>>, vector<18x144xf32>,
    %127 = vector.extract_strided_slice %120 {offsets = [16, 0], sizes = [16, 128], strides = [1, 1]} : vector<32x128xf32> to vector<16x128xf32>
    %cst_54 = arith.constant 0.000000e+00 : f32
    %128 = vector.broadcast %cst_54 : f32 to vector<16x8xf32>
    %129 = tpu.concatenate %128, %127, %128 in 1 : vector<16x8xf32>, vector<16x128xf32>, vector<16x8xf32> -> vector<16x144xf32>
    %cst_55 = arith.constant 0.000000e+00 : f32
    %130 = vector.broadcast %cst_55 : f32 to vector<1x144xf32>
    %131 = tpu.concatenate %130, %129, %130 in 0 : vector<1x144xf32>, vector<16x144xf32>, vector<1x144xf32> -> vector<18x144xf32>
    %c24_56 = arith.constant 24 : index
    %c0_57 = arith.constant 0 : index
    %132 = vector.load %arg10[%c24_56, %c0_57] : memref<48x144xf32, #tpu.memory_space<vmem>>, vector<18x144xf32>
    tpu.vector_store %arg10[%c24_56, %c0_57], %131 {strides = array<i32>} : memref<48x144xf32, #tpu.memory_space<vmem>>, vector<18x144xf32>,
    %c0_58 = arith.constant 0 : index
    %c0_59 = arith.constant 0 : index
    %133 = vector.load %arg10[%c0_58, %c0_59] : memref<48x144xf32, #tpu.memory_space<vmem>>, vector<48x128xf32>
    %c0_60 = arith.constant 0 : index
    %c8_61 = arith.constant 8 : index
    %134 = vector.load %arg10[%c0_60, %c8_61] : memref<48x144xf32, #tpu.memory_space<vmem>>, vector<48x128xf32>
    %c0_62 = arith.constant 0 : index
    %c16_63 = arith.constant 16 : index
    %135 = vector.load %arg10[%c0_62, %c16_63] : memref<48x144xf32, #tpu.memory_space<vmem>>, vector<48x128xf32>
    %cst_64 = arith.constant 0.000000e+00 : f32
    %136 = vector.broadcast %cst_64 : f32 to vector<16x128xf32>
    %137 = vector.extract_strided_slice %133 {offsets = [0, 0], sizes = [16, 128], strides = [1, 1]} : vector<48x128xf32> to vector<16x128xf32>
    %c0_65 = arith.constant 0 : index
    %c0_66 = arith.constant 0 : index
    %138 = vector.load %arg5[%c0_65, %c0_66] : memref<9x128xf32, #tpu.memory_space<vmem>>, vector<1x128xf32>
    %139 = vector.broadcast %138 : vector<1x128xf32> to vector<16x128xf32>
    %140 = arith.mulf %137, %139 : vector<16x128xf32>
    %141 = arith.addf %136, %140 : vector<16x128xf32>
    %142 = vector.extract_strided_slice %134 {offsets = [0, 0], sizes = [16, 128], strides = [1, 1]} : vector<48x128xf32> to vector<16x128xf32>
    %c1_67 = arith.constant 1 : index
    %c0_68 = arith.constant 0 : index
    %143 = vector.load %arg5[%c1_67, %c0_68] : memref<9x128xf32, #tpu.memory_space<vmem>>, vector<1x128xf32>
    %144 = vector.broadcast %143 : vector<1x128xf32> to vector<16x128xf32>
    %145 = arith.mulf %142, %144 : vector<16x128xf32>
    %146 = arith.addf %141, %145 : vector<16x128xf32>
    %147 = vector.extract_strided_slice %135 {offsets = [0, 0], sizes = [16, 128], strides = [1, 1]} : vector<48x128xf32> to vector<16x128xf32>
    %c2_69 = arith.constant 2 : index
    %c0_70 = arith.constant 0 : index
    %148 = vector.load %arg5[%c2_69, %c0_70] : memref<9x128xf32, #tpu.memory_space<vmem>>, vector<1x128xf32>
    %149 = vector.broadcast %148 : vector<1x128xf32> to vector<16x128xf32>
    %150 = arith.mulf %147, %149 : vector<16x128xf32>
    %151 = arith.addf %146, %150 : vector<16x128xf32>
    %152 = vector.extract_strided_slice %133 {offsets = [1, 0], sizes = [16, 128], strides = [1, 1]} : vector<48x128xf32> to vector<16x128xf32>
    %c3_71 = arith.constant 3 : index
    %c0_72 = arith.constant 0 : index
    %153 = vector.load %arg5[%c3_71, %c0_72] : memref<9x128xf32, #tpu.memory_space<vmem>>, vector<1x128xf32>
    %154 = vector.broadcast %153 : vector<1x128xf32> to vector<16x128xf32>
    %155 = arith.mulf %152, %154 : vector<16x128xf32>
    %156 = arith.addf %151, %155 : vector<16x128xf32>
    %157 = vector.extract_strided_slice %134 {offsets = [1, 0], sizes = [16, 128], strides = [1, 1]} : vector<48x128xf32> to vector<16x128xf32>
    %c4_73 = arith.constant 4 : index
    %c0_74 = arith.constant 0 : index
    %158 = vector.load %arg5[%c4_73, %c0_74] : memref<9x128xf32, #tpu.memory_space<vmem>>, vector<1x128xf32>
    %159 = vector.broadcast %158 : vector<1x128xf32> to vector<16x128xf32>
    %160 = arith.mulf %157, %159 : vector<16x128xf32>
    %161 = arith.addf %156, %160 : vector<16x128xf32>
    %162 = vector.extract_strided_slice %135 {offsets = [1, 0], sizes = [16, 128], strides = [1, 1]} : vector<48x128xf32> to vector<16x128xf32>
    %c5_75 = arith.constant 5 : index
    %c0_76 = arith.constant 0 : index
    %163 = vector.load %arg5[%c5_75, %c0_76] : memref<9x128xf32, #tpu.memory_space<vmem>>, vector<1x128xf32>
    %164 = vector.broadcast %163 : vector<1x128xf32> to vector<16x128xf32>
    %165 = arith.mulf %162, %164 : vector<16x128xf32>
    %166 = arith.addf %161, %165 : vector<16x128xf32>
    %167 = vector.extract_strided_slice %133 {offsets = [2, 0], sizes = [16, 128], strides = [1, 1]} : vector<48x128xf32> to vector<16x128xf32>
    %c6_77 = arith.constant 6 : index
    %c0_78 = arith.constant 0 : index
    %168 = vector.load %arg5[%c6_77, %c0_78] : memref<9x128xf32, #tpu.memory_space<vmem>>, vector<1x128xf32>
    %169 = vector.broadcast %168 : vector<1x128xf32> to vector<16x128xf32>
    %170 = arith.mulf %167, %169 : vector<16x128xf32>
    %171 = arith.addf %166, %170 : vector<16x128xf32>
    %172 = vector.extract_strided_slice %134 {offsets = [2, 0], sizes = [16, 128], strides = [1, 1]} : vector<48x128xf32> to vector<16x128xf32>
    %c7_79 = arith.constant 7 : index
    %c0_80 = arith.constant 0 : index
    %173 = vector.load %arg5[%c7_79, %c0_80] : memref<9x128xf32, #tpu.memory_space<vmem>>, vector<1x128xf32>
    %174 = vector.broadcast %173 : vector<1x128xf32> to vector<16x128xf32>
    %175 = arith.mulf %172, %174 : vector<16x128xf32>
    %176 = arith.addf %171, %175 : vector<16x128xf32>
    %177 = vector.extract_strided_slice %135 {offsets = [2, 0], sizes = [16, 128], strides = [1, 1]} : vector<48x128xf32> to vector<16x128xf32>
    %c8_81 = arith.constant 8 : index
    %c0_82 = arith.constant 0 : index
    %178 = vector.load %arg5[%c8_81, %c0_82] : memref<9x128xf32, #tpu.memory_space<vmem>>, vector<1x128xf32>
    %179 = vector.broadcast %178 : vector<1x128xf32> to vector<16x128xf32>
    %180 = arith.mulf %177, %179 : vector<16x128xf32>
    %181 = arith.addf %176, %180 : vector<16x128xf32>
    %cst_83 = arith.constant 0.000000e+00 : f32
    %182 = vector.broadcast %cst_83 : f32 to vector<16x128xf32>
    %183 = vector.extract_strided_slice %133 {offsets = [24, 0], sizes = [16, 128], strides = [1, 1]} : vector<48x128xf32> to vector<16x128xf32>
    %c0_84 = arith.constant 0 : index
    %c0_85 = arith.constant 0 : index
    %184 = vector.load %arg5[%c0_84, %c0_85] : memref<9x128xf32, #tpu.memory_space<vmem>>, vector<1x128xf32>
    %185 = vector.broadcast %184 : vector<1x128xf32> to vector<16x128xf32>
    %186 = arith.mulf %183, %185 : vector<16x128xf32>
    %187 = arith.addf %182, %186 : vector<16x128xf32>
    %188 = vector.extract_strided_slice %134 {offsets = [24, 0], sizes = [16, 128], strides = [1, 1]} : vector<48x128xf32> to vector<16x128xf32>
    %c1_86 = arith.constant 1 : index
    %c0_87 = arith.constant 0 : index
    %189 = vector.load %arg5[%c1_86, %c0_87] : memref<9x128xf32, #tpu.memory_space<vmem>>, vector<1x128xf32>
    %190 = vector.broadcast %189 : vector<1x128xf32> to vector<16x128xf32>
    %191 = arith.mulf %188, %190 : vector<16x128xf32>
    %192 = arith.addf %187, %191 : vector<16x128xf32>
    %193 = vector.extract_strided_slice %135 {offsets = [24, 0], sizes = [16, 128], strides = [1, 1]} : vector<48x128xf32> to vector<16x128xf32>
    %c2_88 = arith.constant 2 : index
    %c0_89 = arith.constant 0 : index
    %194 = vector.load %arg5[%c2_88, %c0_89] : memref<9x128xf32, #tpu.memory_space<vmem>>, vector<1x128xf32>
    %195 = vector.broadcast %194 : vector<1x128xf32> to vector<16x128xf32>
    %196 = arith.mulf %193, %195 : vector<16x128xf32>
    %197 = arith.addf %192, %196 : vector<16x128xf32>
    %198 = vector.extract_strided_slice %133 {offsets = [25, 0], sizes = [16, 128], strides = [1, 1]} : vector<48x128xf32> to vector<16x128xf32>
    %c3_90 = arith.constant 3 : index
    %c0_91 = arith.constant 0 : index
    %199 = vector.load %arg5[%c3_90, %c0_91] : memref<9x128xf32, #tpu.memory_space<vmem>>, vector<1x128xf32>
    %200 = vector.broadcast %199 : vector<1x128xf32> to vector<16x128xf32>
    %201 = arith.mulf %198, %200 : vector<16x128xf32>
    %202 = arith.addf %197, %201 : vector<16x128xf32>
    %203 = vector.extract_strided_slice %134 {offsets = [25, 0], sizes = [16, 128], strides = [1, 1]} : vector<48x128xf32> to vector<16x128xf32>
    %c4_92 = arith.constant 4 : index
    %c0_93 = arith.constant 0 : index
    %204 = vector.load %arg5[%c4_92, %c0_93] : memref<9x128xf32, #tpu.memory_space<vmem>>, vector<1x128xf32>
    %205 = vector.broadcast %204 : vector<1x128xf32> to vector<16x128xf32>
    %206 = arith.mulf %203, %205 : vector<16x128xf32>
    %207 = arith.addf %202, %206 : vector<16x128xf32>
    %208 = vector.extract_strided_slice %135 {offsets = [25, 0], sizes = [16, 128], strides = [1, 1]} : vector<48x128xf32> to vector<16x128xf32>
    %c5_94 = arith.constant 5 : index
    %c0_95 = arith.constant 0 : index
    %209 = vector.load %arg5[%c5_94, %c0_95] : memref<9x128xf32, #tpu.memory_space<vmem>>, vector<1x128xf32>
    %210 = vector.broadcast %209 : vector<1x128xf32> to vector<16x128xf32>
    %211 = arith.mulf %208, %210 : vector<16x128xf32>
    %212 = arith.addf %207, %211 : vector<16x128xf32>
    %213 = vector.extract_strided_slice %133 {offsets = [26, 0], sizes = [16, 128], strides = [1, 1]} : vector<48x128xf32> to vector<16x128xf32>
    %c6_96 = arith.constant 6 : index
    %c0_97 = arith.constant 0 : index
    %214 = vector.load %arg5[%c6_96, %c0_97] : memref<9x128xf32, #tpu.memory_space<vmem>>, vector<1x128xf32>
    %215 = vector.broadcast %214 : vector<1x128xf32> to vector<16x128xf32>
    %216 = arith.mulf %213, %215 : vector<16x128xf32>
    %217 = arith.addf %212, %216 : vector<16x128xf32>
    %218 = vector.extract_strided_slice %134 {offsets = [26, 0], sizes = [16, 128], strides = [1, 1]} : vector<48x128xf32> to vector<16x128xf32>
    %c7_98 = arith.constant 7 : index
    %c0_99 = arith.constant 0 : index
    %219 = vector.load %arg5[%c7_98, %c0_99] : memref<9x128xf32, #tpu.memory_space<vmem>>, vector<1x128xf32>
    %220 = vector.broadcast %219 : vector<1x128xf32> to vector<16x128xf32>
    %221 = arith.mulf %218, %220 : vector<16x128xf32>
    %222 = arith.addf %217, %221 : vector<16x128xf32>
    %223 = vector.extract_strided_slice %135 {offsets = [26, 0], sizes = [16, 128], strides = [1, 1]} : vector<48x128xf32> to vector<16x128xf32>
    %c8_100 = arith.constant 8 : index
    %c0_101 = arith.constant 0 : index
    %224 = vector.load %arg5[%c8_100, %c0_101] : memref<9x128xf32, #tpu.memory_space<vmem>>, vector<1x128xf32>
    %225 = vector.broadcast %224 : vector<1x128xf32> to vector<16x128xf32>
    %226 = arith.mulf %223, %225 : vector<16x128xf32>
    %227 = arith.addf %222, %226 : vector<16x128xf32>
    %228 = tpu.concatenate %181, %227 in 0 : vector<16x128xf32>, vector<16x128xf32> -> vector<32x128xf32>
    %229 = arith.truncf %228 : vector<32x128xf32> to vector<32x128xbf16>
    %c0_102 = arith.constant 0 : index
    %c0_103 = arith.constant 0 : index
    %230 = vector.load %arg6[%c0_102, %c0_103] : memref<128x256xbf16, #tpu.memory_space<vmem>>, vector<128x256xbf16>
    %cst_104 = arith.constant dense<0.000000e+00> : vector<32x256xf32>
    %231 = tpu.matmul %229, %230, %cst_104 {dimension_numbers = #tpu.dot_dimension_numbers<[1], [0], [0], [1], [0, 0, 1, 1], [], []>} : vector<32x128xbf16>, vector<128x256xbf16>, vector<32x256xf32> -> vector<32x256xf32>
    %c0_105 = arith.constant 0 : index
    %c0_106 = arith.constant 0 : index
    %232 = vector.load %arg7[%c0_105, %c0_106] : memref<1x256xf32, #tpu.memory_space<vmem>>, vector<1x256xf32>
    %233 = vector.broadcast %232 : vector<1x256xf32> to vector<32x256xf32>
    %234 = arith.addf %231, %233 : vector<32x256xf32>
    %235 = vector.extract_strided_slice %234 {offsets = [0, 0], sizes = [16, 256], strides = [1, 1]} : vector<32x256xf32> to vector<16x256xf32>
    %c0_107 = arith.constant 0 : index
    %c0_108 = arith.constant 0 : index
    %c0_109 = arith.constant 0 : index
    %236 = vector.load %arg8[%c0_107, %c0_108, %c0_109] : memref<2x16x256xf32, #tpu.memory_space<vmem>>, vector<1x16x256xf32>
    %237 = vector.shape_cast %236 : vector<1x16x256xf32> to vector<16x256xf32>
    %238 = vector.shape_cast %235 : vector<16x256xf32> to vector<1x16x256xf32>
    tpu.vector_store %arg8[%c0_107, %c0_108, %c0_109], %238 {strides = array<i32>} : memref<2x16x256xf32, #tpu.memory_space<vmem>>, vector<1x16x256xf32>,
    %239 = vector.extract_strided_slice %234 {offsets = [16, 0], sizes = [16, 256], strides = [1, 1]} : vector<32x256xf32> to vector<16x256xf32>
    %c1_110 = arith.constant 1 : index
    %c0_111 = arith.constant 0 : index
    %c0_112 = arith.constant 0 : index
    %240 = vector.load %arg8[%c1_110, %c0_111, %c0_112] : memref<2x16x256xf32, #tpu.memory_space<vmem>>, vector<1x16x256xf32>
    %241 = vector.shape_cast %240 : vector<1x16x256xf32> to vector<16x256xf32>
    %242 = vector.shape_cast %239 : vector<16x256xf32> to vector<1x16x256xf32>
    tpu.vector_store %arg8[%c1_110, %c0_111, %c0_112], %242 {strides = array<i32>} : memref<2x16x256xf32, #tpu.memory_space<vmem>>, vector<1x16x256xf32>,
    return
  }
  func.func @transform_0(%arg0: i32) -> (i32, i32, i32) {
    %c0_i32 = arith.constant 0 : i32
    %c0_i32_0 = arith.constant 0 : i32
    %c0_i32_1 = arith.constant 0 : i32
    return %arg0, %c0_i32, %c0_i32_0 : i32, i32, i32
  }
  func.func @transform_1(%arg0: i32) -> (i32, i32) {
    %c0_i32 = arith.constant 0 : i32
    %c0_i32_0 = arith.constant 0 : i32
    %c0_i32_1 = arith.constant 0 : i32
    return %c0_i32, %c0_i32_0 : i32, i32
  }
  func.func @transform_2(%arg0: i32) -> (i32, i32) {
    %c0_i32 = arith.constant 0 : i32
    %c0_i32_0 = arith.constant 0 : i32
    %c0_i32_1 = arith.constant 0 : i32
    return %c0_i32, %c0_i32_0 : i32, i32
  }
  func.func @transform_3(%arg0: i32) -> (i32, i32) {
    %c0_i32 = arith.constant 0 : i32
    %c0_i32_0 = arith.constant 0 : i32
    %c0_i32_1 = arith.constant 0 : i32
    return %c0_i32, %c0_i32_0 : i32, i32
  }
  func.func @transform_4(%arg0: i32) -> (i32, i32) {
    %c0_i32 = arith.constant 0 : i32
    %c0_i32_0 = arith.constant 0 : i32
    %c0_i32_1 = arith.constant 0 : i32
    return %c0_i32, %c0_i32_0 : i32, i32
  }
  func.func @transform_5(%arg0: i32) -> (i32, i32) {
    %c0_i32 = arith.constant 0 : i32
    %c0_i32_0 = arith.constant 0 : i32
    %c0_i32_1 = arith.constant 0 : i32
    return %c0_i32, %c0_i32_0 : i32, i32
  }
  func.func @transform_6(%arg0: i32) -> (i32, i32) {
    %c0_i32 = arith.constant 0 : i32
    %c0_i32_0 = arith.constant 0 : i32
    %c0_i32_1 = arith.constant 0 : i32
    return %c0_i32, %c0_i32_0 : i32, i32
  }
  func.func @transform_7(%arg0: i32) -> (i32, i32, i32) {
    %c0_i32 = arith.constant 0 : i32
    %c0_i32_0 = arith.constant 0 : i32
    %c0_i32_1 = arith.constant 0 : i32
    return %arg0, %c0_i32, %c0_i32_0 : i32, i32, i32
  }
}

</mosaic_0001>

<bundles_post_ra>
// kernel: tpu_custom_call.1
= control target key start
LH: loop header
LB: loop body
LE: loop exit
PB: predicated region body
PF: predicated region fallthrough
CT: control target
= control target key end

     0   :  { %12 = vsyncpa [#allocation5], 0  ;;  %s2833_s0 = inlined_call_operand.hbm [shape: f32[2,16,128], index: 0, kind: input, shape index: {}]   ;;  %s2834_s1 = inlined_call_operand.hbm [shape: f32[9,128], index: 1, kind: input, shape index: {}]   ;;  %s2835_s2 = inlined_call_operand.hbm [shape: bf16[128,128], index: 2, kind: input, shape index: {}]   ;;  %s2836_s3 = inlined_call_operand.vmem [shape: f32[1,128], index: 3, kind: input, shape index: {}]   ;;  %s2837_s4 = inlined_call_operand.hbm [shape: f32[9,128], index: 4, kind: input, shape index: {}]   ;;  %s2838_s5 = inlined_call_operand.hbm [shape: bf16[128,256], index: 5, kind: input, shape index: {}]   ;;  %s2839_s6 = inlined_call_operand.vmem [shape: f32[1,256], index: 6, kind: input, shape index: {}]   ;;  %s2840_s7 = inlined_call_operand.hbm [shape: f32[2,16,256], index: 7, kind: output, shape index: {}]  }
   0x1   :  { %13 = vsyncpa [#allocation8], 0 }
   0x2   :  { %14 = vsyncpa [#allocation11], 0 }
   0x3   :  { %15 = vsyncpa [#allocation6], 0  ;;  %s1879_s24 = smov [#allocation7]   ;;  %s1880_s26 = smov [#allocation10]  }
   0x4   :  { %s33_s25 = sshll.u32 %s1879_s24, 4  ;;  %s59_s27 = sshll.u32 %s1880_s26, 4  ;;  %s34_s25 = int_to_ptr.vmem [resolvable:$true] %s33_s25  ;;  %s60_s27 = int_to_ptr.vmem [resolvable:$true] %s59_s27 }
   0x5   :  { %s1759_s28 = scalar_lea.vmem %s34_s25, 256  ;;  %p1764_p1 = scmp.lt.s32.totalorder %s34_s25, %s34_s25 }
   0x6   :  { %p1760_p0 = scmp.ne.s32.totalorder %s34_s25, %s1759_s28  ;;  %p1765_p2 = scmp.lt.s32.totalorder %s1759_s28, %s1759_s28 }
   0x8   :  { %p1766_p3 = por %p1765_p2, %p1764_p1 }
   0xa   :  { %p1767_p4 = pnand %p1766_p3, %p1760_p0 }
   0xc   :  { %1770 = shalt.err (!%p1767_p4)
}
   0xd   :  { %s1881_s29 = smov 128   ;;  %s1882_s30 = smov 8  }
   0xe   :  { %39 = dma.hbm_to_vmem [thread:$0]  %s2834_s1, 256, %s34_s25, [#allocation8], %s1881_s29, %s1881_s29, %s1882_s30  }
   0xf   :  { %s1779_s10 = scalar_lea.vmem %s60_s27, 256  ;;  %p1784_p6 = scmp.lt.s32.totalorder %s60_s27, %s60_s27 }
  0x10   :  { %p1780_p5 = scmp.ne.s32.totalorder %s60_s27, %s1779_s10  ;;  %p1785_p7 = scmp.lt.s32.totalorder %s1779_s10, %s1779_s10 }
  0x12   :  { %p1786_p8 = por %p1785_p7, %p1784_p6 }
  0x14   :  { %p1787_p9 = pnand %p1786_p8, %p1780_p5 }
  0x16   :  { %1790 = shalt.err (!%p1787_p9)
}
  0x17   :  { %65 = dma.hbm_to_vmem [thread:$0]  %s2837_s4, 256, %s60_s27, [#allocation11], %s1881_s29, %s1881_s29, %s1882_s30  }
  0x18   :  { %s1883_s13 = smov [#allocation4]   ;;  %s1884_s15 = smov [#allocation9]  }
  0x19   :  { %s21_s14 = sshll.u32 %s1883_s13, 4  ;;  %s45_s16 = sshll.u32 %s1884_s15, 4  ;;  %s22_s14 = int_to_ptr.vmem [resolvable:$true] %s21_s14  ;;  %s46_s16 = int_to_ptr.vmem [resolvable:$true] %s45_s16 }
  0x1a   :  { %s1799_s1 = scalar_lea.vmem %s22_s14, 512  ;;  %p1804_p11 = scmp.lt.s32.totalorder %s22_s14, %s22_s14 }
  0x1b   :  { %p1800_p10 = scmp.ne.s32.totalorder %s22_s14, %s1799_s1  ;;  %p1805_p12 = scmp.lt.s32.totalorder %s1799_s1, %s1799_s1 }
  0x1d   :  { %p1806_p13 = por %p1805_p12, %p1804_p11 }
  0x1f   :  { %p1807_p0 = pnand %p1806_p13, %p1800_p10 }
  0x21   :  { %1810 = shalt.err (!%p1807_p0)
}
  0x22   :  { %27 = dma.hbm_to_vmem [thread:$0]  %s2833_s0, 512, %s22_s14, [#allocation5], %s1881_s29, %s1881_s29, %s1882_s30  }
  0x23   :  { %s1819_s4 = scalar_lea.vmem %s46_s16, 1024  ;;  %p1824_p2 = scmp.lt.s32.totalorder %s46_s16, %s46_s16 }
  0x24   :  { %p1820_p1 = scmp.ne.s32.totalorder %s46_s16, %s1819_s4  ;;  %p1825_p3 = scmp.lt.s32.totalorder %s1819_s4, %s1819_s4 }
  0x26   :  { %p1826_p4 = por %p1825_p3, %p1824_p2 }
  0x28   :  { %p1827_p5 = pnand %p1826_p4, %p1820_p1 }
  0x2a   :  { %1830 = shalt.err (!%p1827_p5)
}
  0x2b   :  { %s1885_s19 = smov 64   ;;  %s1886_s20 = smov 4  }
  0x2c   :  { %51 = dma.hbm_to_vmem [thread:$0]  %s2835_s2, 1024, %s46_s16, [#allocation8], %s1885_s19, %s1885_s19, %s1886_s20  }
  0x2d   :  { %s1887_s23 = smov [#allocation12]  }
  0x2e   :  { %s71_s24 = sshll.u32 %s1887_s23, 4  ;;  %s72_s24 = int_to_ptr.vmem [resolvable:$true] %s71_s24 }
  0x2f   :  { %s1839_s25 = scalar_lea.vmem %s72_s24, 2048  ;;  %p1844_p7 = scmp.lt.s32.totalorder %s72_s24, %s72_s24 }
  0x30   :  { %p1840_p6 = scmp.ne.s32.totalorder %s72_s24, %s1839_s25  ;;  %p1845_p8 = scmp.lt.s32.totalorder %s1839_s25, %s1839_s25 }
  0x32   :  { %p1846_p9 = por %p1845_p8, %p1844_p7 }
  0x34   :  { %p1847_p10 = pnand %p1846_p9, %p1840_p6 }
  0x36   :  { %1850 = shalt.err (!%p1847_p10)
}
  0x37   :  { %77 = dma.hbm_to_vmem [thread:$0]  %s2838_s5, 2048, %s72_s24, [#allocation11], %s1881_s29, %s1881_s29, %s1882_s30  }
  0x38   :  { %1871 = dma.done.wait [#allocation5], 512  }
  0x39   :  { %1872 = vsyncadd [#allocation5], 4294966784 }
  0x3a   :  { %1873 = dma.done.wait [#allocation8], 1280  }
  0x3b   :  { %1874 = vsyncadd [#allocation8], 4294966016 }
  0x3c   :  { %1875 = dma.done.wait [#allocation11], 2304  }
  0x3d   :  { %1876 = vsyncadd [#allocation11], 4294964992  ;;  %v1633_v0 = vld [vmem:[#allocation7 + $0x2] ss:$0 sm:$0xff]  ;;  %v1632_v1 = vld [vmem:[#allocation7 + $0x1] ss:$0 sm:$0xff] }
  0x3e   :  { %v98_v2 = vld [vmem:[#allocation4 + $0x10] sm:$0xff]  ;;  %s1888_s2 = smov 16   ;;  %211 = vrot.lane.b32.xlu0 %v1632_v1, %s1882_s30  ;;  %v96_v4 = vld [vmem:[#allocation4] sm:$0xff]  ;;  %v99_v5 = vld [vmem:[#allocation4 + $0x18] sm:$0xff]  ;;  %vm112_vm0 = vcmask 64512   ;;  %vm121_vm1 = vcmask 1040384  }
  0x3f   :  { %243 = vrot.lane.b32.xlu1 %v1633_v0, %s1888_s2  ;;  %v102_v3 = vmax.f32 %v98_v2, 0.0  ;;  %v100_v6 = vmax.f32 %v96_v4, 0.0  ;;  %v97_v7 = vld [vmem:[#allocation4 + $0x8] sm:$0xff]  ;;  %v103_v8 = vmax.f32 %v99_v5, 0.0  ;;  %v1636_v10 = vld [vmem:[#allocation7 + $0x5] ss:$0 sm:$0xff] }
  0x40   :  { %v101_v9 = vmax.f32 %v97_v7, 0.0  ;;  %v1635_v11 = vld [vmem:[#allocation7 + $0x4] ss:$0 sm:$0xff]  ;;  %v1639_v12 = vld [vmem:[#allocation7 + $0x8] ss:$0 sm:$0xff]  ;;  %vm139_vm2 = vcmask 130048  }
  0x41   :  { %v1638_v13 = vld [vmem:[#allocation7 + $0x7] ss:$0 sm:$0xff]  ;;  %vm144_vm3 = vcmask 123904   ;;  %s1889_s5 = smov 120   ;;  %s1890_s27 = smov 112   ;;  %vm280_vm4 = vcmask 1046528  }
  0x42   :  { %106 = vrot.lane.b32.xlu0 %v100_v6, %s1882_s30  ;;  %vm391_vm5 = vcmask 1045504   ;;  %vm230_vm6 = vcmask 982016   ;;  %vm262_vm7 = vcmask 916480  }
  0x43   :  { %148 = vrot.lane.b32.xlu1 %v102_v3, %s1882_s30 }
  0x46   :  { %108 = vrot.lane.b32.xlu0 %v101_v9, %s1882_s30 }
  0x47   :  { %150 = vrot.lane.b32.xlu1 %v103_v8, %s1882_s30 }
  0x4a   :  { %296 = vrot.lane.b32.xlu0 %v1635_v11, %s1882_s30 }
  0x4b   :  { %341 = vrot.lane.b32.xlu1 %v1636_v10, %s1888_s2 }
  0x4e   :  { %407 = vrot.lane.b32.xlu0 %v1638_v13, %s1882_s30 }
  0x4f   :  { %452 = vrot.lane.b32.xlu1 %v1639_v12, %s1888_s2 }
  0xb0   :  { %v1973_v15 = vpop.permute.xlu0 %211 }
  0xb1   :  { %v1971_v14 = vpop.permute.xlu1 %243 }
  0xb4   :  { %v107_v17 = vpop.permute.xlu0 %106 }
  0xb5   :  { %v149_v16 = vpop.permute.xlu1 %148  ;;  %v113_v20 = vsel %vm112_vm0, 0.0, %v107_v17  ;;  %v115_v21 = vsel %vm112_vm0, %v107_v17, 0.0 }
  0xb6   :  { %v154_v18 = vsel %vm112_vm0, 0.0, %v149_v16  ;;  %v156_v19 = vsel %vm112_vm0, %v149_v16, 0.0  ;;  %v122_v24 = vrot.slane %v113_v20, 7  ;;  %v123_v25 = vrot.slane %v115_v21, 7 }
  0xb7   :  { %v162_v22 = vrot.slane %v154_v18, 7  ;;  %v163_v23 = vrot.slane %v156_v19, 7 }
  0xb8   :  { %v1984_v28 = vsel %vm121_vm1, 0.0, %v122_v24  ;;  %v135_v29 = vsel %vm121_vm1, 0.0, %v123_v25  ;;  %v109_v31 = vpop.permute.xlu0 %108 }
  0xb9   :  { %v1980_v26 = vsel %vm121_vm1, 0.0, %v162_v22  ;;  %v175_v27 = vsel %vm121_vm1, 0.0, %v163_v23  ;;  %v151_v30 = vpop.permute.xlu1 %150  ;;  %140 = vst.msk [vmem:[#allocation2 + $0x8] sm:$0xff] %vm139_vm2, %v135_v29  ;;  %v114_v34 = vsel %vm112_vm0, 0.0, %v109_v31  ;;  %v116_v35 = vsel %vm112_vm0, %v109_v31, 0.0 }
  0xba   :  { %179 = vst.msk [vmem:[#allocation2 + $0x38] sm:$0xff] %vm139_vm2, %v175_v27  ;;  %v155_v32 = vsel %vm112_vm0, 0.0, %v151_v30  ;;  %v157_v33 = vsel %vm112_vm0, %v151_v30, 0.0  ;;  %v124_v38 = vrot.slane %v114_v34, 7  ;;  %v126_v39 = vrot.slane %v116_v35, 7 }
  0xbb   :  { %v164_v36 = vrot.slane %v155_v32, 7  ;;  %v166_v37 = vrot.slane %v157_v33, 7  ;;  %v214_v40 = vmul.f32 %v1973_v15, %v1984_v28  ;;  %v495_v52 = vmul.f32 %v1973_v15, %v1980_v26 }
  0xbc   :  { %v2004_v45 = vsel %vm121_vm1, %v122_v24, %v124_v38  ;;  %v127_v46 = vsel %vm121_vm1, %v123_v25, %v126_v39  ;;  %v136_v47 = vsel %vm121_vm1, %v124_v38, 0.0  ;;  %v137_v48 = vsel %vm121_vm1, %v126_v39, 0.0  ;;  %v2035_v58 = vpop.permute.xlu0 %296 }
  0xbd   :  { %v1996_v41 = vsel %vm121_vm1, %v162_v22, %v164_v36  ;;  %v167_v42 = vsel %vm121_vm1, %v163_v23, %v166_v37  ;;  %v176_v43 = vsel %vm121_vm1, %v164_v36, 0.0  ;;  %v177_v44 = vsel %vm121_vm1, %v166_v37, 0.0  ;;  %222 = vrot.lane.b32.xlu0 %v214_v40, %s1889_s5  ;;  %142 = vst.msk [vmem:[#allocation2 + $0x18] sm:$0xff] %vm139_vm2, %v127_v46  ;;  %143 = vst [vmem:[#allocation2 + $0x20] sm:$0x3] %v136_v47  ;;  %v2043_v61 = vpop.permute.xlu1 %341 }
  0xbe   :  { %181 = vst.msk [vmem:[#allocation2 + $0x48] sm:$0xff] %vm139_vm2, %v167_v42  ;;  %182 = vst [vmem:[#allocation2 + $0x50] sm:$0x3] %v176_v43  ;;  %v216_v49 = vmul.f32 %v1973_v15, %v2004_v45  ;;  %v497_v56 = vmul.f32 %v1973_v15, %v1996_v41  ;;  %v246_v60 = vmul.f32 %v1971_v14, %v1984_v28 }
  0xbf   :  { %183 = vst.msk [vmem:[#allocation2 + $0x58] sm:$0x3] %vm144_vm3, %v177_v44  ;;  %145 = vst.msk [vmem:[#allocation2 + $0x28] sm:$0x3] %vm144_vm3, %v137_v48  ;;  %v248_v63 = vmul.f32 %v1971_v14, %v2004_v45  ;;  %v299_v1 = vmul.f32 %v2035_v58, %v1984_v28  ;;  %v2057_v2 = vmul.f32 %v2035_v58, %v2004_v45 }
  0xc0   :  { %v2014_v50 = vld [vmem:[#allocation2 + $0x8] sm:$0xff]  ;;  %v2050_v0 = vpop.permute.xlu0 %407  ;;  %v2063_v4 = vmul.f32 %v2035_v58, %v1980_v26  ;;  %v517_v5 = vmul.f32 %v1971_v14, %v1980_v26  ;;  %v519_v6 = vmul.f32 %v1971_v14, %v1996_v41  ;;  %v2071_v7 = vmul.f32 %v2035_v58, %v1996_v41 }
  0xc1   :  { %v215_v51 = vmul.f32 %v1973_v15, %v2014_v50  ;;  %226 = vrot.lane.b32.xlu0 %v216_v49, %s1889_s5  ;;  %v2027_v55 = vld [vmem:[#allocation2 + $0x38] sm:$0xff]  ;;  %v247_v3 = vmul.f32 %v1971_v14, %v2014_v50  ;;  %v2073_v8 = vpop.permute.xlu1 %452  ;;  %v2082_v11 = vmul.f32 %v2043_v61, %v1984_v28  ;;  %v2086_v12 = vmul.f32 %v2043_v61, %v2004_v45 }
  0xc2   :  { %v496_v57 = vmul.f32 %v1973_v15, %v2027_v55  ;;  %v518_v9 = vmul.f32 %v1971_v14, %v2027_v55  ;;  %v641_v13 = vmul.f32 %v2050_v0, %v1980_v26  ;;  %v311_v16 = vrot.slane %v299_v1, 1 }
  0xc3   :  { %224 = vrot.lane.b32.xlu1 %v215_v51, %s1889_s5  ;;  %v312_v17 = vrot.slane %v2057_v2, 1  ;;  %v2096_v18 = vmul.f32 %v2050_v0, %v1996_v41  ;;  %v2104_v21 = vmul.f32 %v2035_v58, %v2027_v55  ;;  %v566_v22 = vrot.slane %v2063_v4, 1 }
  0xc4   :  { %v2022_v53 = vld [vmem:[#allocation2 + $0x18] sm:$0xff]  ;;  %v2078_v10 = vld [vmem:[#allocation2 + $0x20] sm:$0xff]  ;;  %v653_v24 = vrot.slane %v641_v13, 2  ;;  %v567_v27 = vrot.slane %v2071_v7, 1  ;;  %v456_v30 = vmul.f32 %v2073_v8, %v2014_v50  ;;  %v356_v31 = vrot.slane %v2082_v11, 1 }
  0xc5   :  { %503 = vrot.lane.b32.xlu0 %v495_v52, %s1889_s5  ;;  %v217_v54 = vmul.f32 %v1973_v15, %v2022_v53  ;;  %v2037_v59 = vld [vmem:[#allocation2 + $0x48] sm:$0xff]  ;;  %v249_v19 = vmul.f32 %v1971_v14, %v2022_v53  ;;  %v2107_v23 = vld [vmem:[#allocation2 + $0x50] sm:$0xff]  ;;  %v303_v25 = vmul.f32 %v2035_v58, %v2078_v10  ;;  %v654_v29 = vrot.slane %v2096_v18, 2 }
  0xc6   :  { %v498_v62 = vmul.f32 %v1973_v15, %v2037_v59  ;;  %v300_v15 = vmul.f32 %v2035_v58, %v2014_v50  ;;  %v2100_v20 = vld [vmem:[#allocation2 + $0x28] sm:$0xff]  ;;  %v2119_v32 = vmul.f32 %v2073_v8, %v2022_v53  ;;  %v455_v33 = vmul.f32 %v2073_v8, %v1984_v28  ;;  %v2172_v2 = vld [vmem:[#allocation2 + $0x58] sm:$0xff] }
  0xc7   :  { %228 = vrot.lane.b32.xlu1 %v217_v54, %s1889_s5  ;;  %v2125_v34 = vmul.f32 %v2073_v8, %v2004_v45  ;;  %v302_v35 = vmul.f32 %v2035_v58, %v2022_v53  ;;  %v304_v36 = vmul.f32 %v2035_v58, %v2100_v20  ;;  %v558_v37 = vmul.f32 %v2035_v58, %v2107_v23 }
  0xc8   :  { %v2137_v38 = vsel %vm391_vm5, %v653_v24, %v654_v29  ;;  %v470_v39 = vrot.slane %v456_v30, 2  ;;  %v471_v40 = vrot.slane %v2119_v32, 2  ;;  %v467_v42 = vrot.slane %v455_v33, 2  ;;  %v1653_v32 = vld [vmem:[#allocation10 + $0x4] ss:$0 sm:$0xff] }
  0xc9   :  { %507 = vrot.lane.b32.xlu0 %v497_v56, %s1889_s5  ;;  %v468_v43 = vrot.slane %v2125_v34, 2  ;;  %v313_v44 = vsel %vm280_vm4, %v311_v16, %v312_v17  ;;  %v317_v46 = vrot.slane %v303_v25, 1  ;;  %v2144_v47 = vmul.f32 %v2035_v58, %v2037_v59 }
  0xca   :  { %v678_v48 = vmul.f32 %v2073_v8, %v2027_v55  ;;  %v2152_v49 = vsel %vm391_vm5, %v470_v39, %v471_v40  ;;  %v2161_v52 = vmul.f32 %v2073_v8, %v2037_v59  ;;  %v677_v54 = vmul.f32 %v2073_v8, %v1980_v26 }
  0xcb   :  { %505 = vrot.lane.b32.xlu1 %v496_v57, %s1889_s5  ;;  %v2157_v51 = vsel %vm391_vm5, %v467_v42, %v468_v43  ;;  %v520_v56 = vmul.f32 %v1971_v14, %v2037_v59  ;;  %v315_v57 = vrot.slane %v302_v35, 1  ;;  %v319_v1 = vrot.slane %v304_v36, 1 }
  0xcc   :  { %v693_v4 = vrot.slane %v2161_v52, 2  ;;  %v569_v7 = vrot.slane %v2104_v21, 1  ;;  %v357_v14 = vrot.slane %v2086_v12, 1  ;;  %v318_v13 = vsel %vm280_vm4, %v312_v17, %v317_v46 }
  0xcd   :  { %254 = vrot.lane.b32.xlu0 %v246_v60, %s1890_s27  ;;  %v692_v60 = vrot.slane %v678_v48, 2  ;;  %v570_v16 = vrot.slane %v2144_v47, 1  ;;  %v559_v21 = vmul.f32 %v2035_v58, %v2172_v2  ;;  %v320_v30 = vsel %vm280_vm4, %v315_v57, %v319_v1 }
  0xce   :  { %v349_v11 = vmul.f32 %v2043_v61, %v2100_v20 }
  0xcf   :  { %509 = vrot.lane.b32.xlu1 %v498_v62, %s1889_s5  ;;  %v2170_v62 = vmul.f32 %v2073_v8, %v1996_v41  ;;  %v2185_v24 = vsel %vm391_vm5, %v692_v60, %v693_v4 }
  0xd1   :  { %258 = vrot.lane.b32.xlu0 %v248_v63, %s1890_s27  ;;  %v1634_v63 = vld [vmem:[#allocation7 + $0x3] ss:$0 sm:$0xff] }
  0xd2   :  { %v274_v25 = vmul.f32 %v1634_v63, %v1984_v28  ;;  %v275_v35 = vmul.f32 %v1634_v63, %v2004_v45  ;;  %v276_v36 = vmul.f32 %v1634_v63, %v2078_v10  ;;  %v539_v39 = vmul.f32 %v1634_v63, %v1980_v26 }
  0xd3   :  { %256 = vrot.lane.b32.xlu1 %v247_v3, %s1890_s27  ;;  %v572_v3 = vrot.slane %v558_v37, 1  ;;  %v540_v58 = vmul.f32 %v1634_v63, %v1996_v41  ;;  %v541_v42 = vmul.f32 %v1634_v63, %v2107_v23 }
  0xd4   :  { %v281_v37 = vrot.slane %v274_v25, 1  ;;  %v284_v46 = vrot.slane %v276_v36, 1 }
  0xd5   :  { %525 = vrot.lane.b32.xlu0 %v517_v5, %s1890_s27  ;;  %v689_v5 = vrot.slane %v677_v54, 2  ;;  %v573_v33 = vsel %vm280_vm4, %v567_v27, %v572_v3  ;;  %v546_v54 = vrot.slane %v540_v58, 1  ;;  %v590_v58 = vmul.f32 %v2043_v61, %v1980_v26 }
  0xd7   :  { %260 = vrot.lane.b32.xlu1 %v249_v19, %s1890_s27  ;;  %v568_v19 = vsel %vm280_vm4, %v566_v22, %v567_v27  ;;  %v1637_v22 = vld [vmem:[#allocation7 + $0x6] ss:$0 sm:$0xff]  ;;  %v545_v27 = vrot.slane %v539_v39, 1 }
  0xd8   :  { %v385_v47 = vmul.f32 %v1637_v22, %v1984_v28  ;;  %v386_v48 = vmul.f32 %v1637_v22, %v2004_v45  ;;  %v628_v36 = vmul.f32 %v1637_v22, %v2107_v23 }
  0xd9   :  { %529 = vrot.lane.b32.xlu0 %v519_v6, %s1890_s27  ;;  %v314_v6 = vrot.slane %v300_v15, 1 }
  0xda   :  { %v392_v1 = vrot.slane %v385_v47, 2  ;;  %v393_v3 = vrot.slane %v386_v48, 2  ;;  %v347_v47 = vmul.f32 %v2043_v61, %v2022_v53 }
  0xdb   :  { %527 = vrot.lane.b32.xlu1 %v518_v9, %s1890_s27  ;;  %v690_v9 = vrot.slane %v2170_v62, 2  ;;  %v316_v15 = vsel %vm280_vm4, %v314_v6, %v315_v57  ;;  %v387_v57 = vmul.f32 %v1637_v22, %v2078_v10 }
  0xdc   :  { %v2226_v25 = vsel %vm391_vm5, %v392_v1, %v393_v3 }
  0xdd   :  { %321 = vrot.lane.b32.xlu0 %v313_v44, %s1889_s5  ;;  %v2194_v17 = vsel %vm391_vm5, %v689_v5, %v690_v9  ;;  %v282_v44 = vrot.slane %v275_v35, 1  ;;  %v2216_v5 = vsel %vm280_vm4, %v545_v27, %v546_v54  ;;  %v627_v35 = vmul.f32 %v1637_v22, %v1996_v41 }
  0xdf   :  { %531 = vrot.lane.b32.xlu1 %v520_v56, %s1890_s27  ;;  %v548_v56 = vrot.slane %v541_v42, 1  ;;  %v2210_v60 = vsel %vm280_vm4, %v281_v37, %v282_v44  ;;  %v2213_v63 = vsel %vm280_vm4, %v282_v44, %v284_v46  ;;  %v635_v42 = vrot.slane %v628_v36, 2 }
  0xe0   :  { %v571_v44 = vsel %vm280_vm4, %v569_v7, %v570_v16  ;;  %v574_v46 = vrot.slane %v559_v21, 1  ;;  %v345_v21 = vmul.f32 %v2043_v61, %v2014_v50  ;;  %v410_v36 = vmul.f32 %v2050_v0, %v1984_v28 }
  0xe1   :  { %325 = vrot.lane.b32.xlu0 %v318_v13, %s1889_s5  ;;  %v2219_v6 = vsel %vm280_vm4, %v546_v54, %v548_v56  ;;  %v395_v13 = vrot.slane %v387_v57, 2  ;;  %v360_v56 = vrot.slane %v347_v47, 1  ;;  %v602_v57 = vrot.slane %v590_v58, 1 }
  0xe2   :  { %v575_v54 = vsel %vm280_vm4, %v570_v16, %v574_v46  ;;  %v422_v47 = vrot.slane %v410_v36, 2 }
  0xe3   :  { %323 = vrot.lane.b32.xlu1 %v316_v15, %s1889_s5  ;;  %v348_v15 = vmul.f32 %v2043_v61, %v2078_v10  ;;  %v2232_v37 = vsel %vm391_vm5, %v393_v3, %v395_v13  ;;  %v594_v3 = vmul.f32 %v2043_v61, %v2107_v23  ;;  %v359_v13 = vrot.slane %v345_v21, 1 }
  0xe5   :  { %576 = vrot.lane.b32.xlu0 %v568_v19, %s1889_s5  ;;  %v626_v19 = vmul.f32 %v1637_v22, %v1980_v26  ;;  %v592_v22 = vmul.f32 %v2043_v61, %v1996_v41  ;;  %v362_v48 = vrot.slane %v348_v15, 1  ;;  %v361_v16 = vsel %vm280_vm4, %v359_v13, %v360_v56 }
  0xe6   :  { %v591_v15 = vmul.f32 %v2043_v61, %v2027_v55  ;;  %v415_v13 = vmul.f32 %v2050_v0, %v2100_v20 }
  0xe7   :  { %327 = vrot.lane.b32.xlu1 %v320_v30, %s1889_s5  ;;  %v632_v39 = vrot.slane %v626_v19, 2  ;;  %v633_v30 = vrot.slane %v627_v35, 2  ;;  %v603_v1 = vrot.slane %v592_v22, 1  ;;  %v364_v19 = vrot.slane %v349_v11, 1 }
  0xe8   :  { %v593_v35 = vmul.f32 %v2043_v61, %v2037_v59 }
  0xe9   :  { %580 = vrot.lane.b32.xlu0 %v573_v33, %s1889_s5  ;;  %v358_v33 = vsel %vm280_vm4, %v356_v31, %v357_v14  ;;  %v2248_v27 = vsel %vm391_vm5, %v632_v39, %v633_v30  ;;  %v2251_v7 = vsel %vm391_vm5, %v633_v30, %v635_v42  ;;  %v363_v31 = vsel %vm280_vm4, %v357_v14, %v362_v48  ;;  %v1719_v48 = vld [vmem:[#allocation9 + $0x38] sm:$0xff]  }
  0xea   :  { %v604_v12 = vsel %vm280_vm4, %v602_v57, %v603_v1  ;;  %v608_v14 = vrot.slane %v594_v3, 1  ;;  %v412_v39 = vmul.f32 %v2050_v0, %v2004_v45  ;;  %v365_v58 = vsel %vm280_vm4, %v360_v56, %v364_v19  ;;  %1684 = vmatprep.subr.bf16.mxu0 %v1719_v48  ;;  %v1721_v19 = vld [vmem:[#allocation9 + $0x28] sm:$0xff]  }
  0xeb   :  { %578 = vrot.lane.b32.xlu1 %v571_v44, %s1889_s5  ;;  %v605_v30 = vrot.slane %v591_v15, 1  ;;  %v606_v42 = vrot.slane %v593_v35, 1  ;;  %v595_v44 = vmul.f32 %v2043_v61, %v2172_v2  ;;  %v413_v56 = vmul.f32 %v2050_v0, %v2022_v53  ;;  %1685 = vmatpush3.bf16.msra.mxu0 %v1719_v48  ;;  %v1725_v48 = vld [vmem:[#allocation9 + $0x8] sm:$0xff]  }
  0xec   :  { %v609_v46 = vsel %vm280_vm4, %v603_v1, %v608_v14  ;;  %v423_v22 = vrot.slane %v412_v39, 2  ;;  %v411_v57 = vmul.f32 %v2050_v0, %v2014_v50  ;;  %v430_v35 = vrot.slane %v415_v13, 2  ;;  %v1722_v39 = vld [vmem:[#allocation9 + $0x20] sm:$0xff]  }
  0xed   :  { %366 = vrot.lane.b32.xlu0 %v358_v33, %s1890_s27  ;;  %v414_v33 = vmul.f32 %v2050_v0, %v2078_v10  ;;  %v607_v21 = vsel %vm280_vm4, %v605_v30, %v606_v42  ;;  %v426_v3 = vrot.slane %v413_v56, 2  ;;  %v644_v14 = vmul.f32 %v2050_v0, %v2037_v59 }
  0xee   :  { %v424_v61 = vsel %vm391_vm5, %v422_v47, %v423_v22  ;;  %v425_v15 = vrot.slane %v411_v57, 2 }
  0xef   :  { %582 = vrot.lane.b32.xlu1 %v575_v54, %s1889_s5  ;;  %v610_v54 = vrot.slane %v595_v44, 1  ;;  %v428_v11 = vrot.slane %v414_v33, 2  ;;  %v646_v44 = vmul.f32 %v2050_v0, %v2172_v2  ;;  %v681_v33 = vmul.f32 %v2073_v8, %v2107_v23 }
  0xf0   :  { %v427_v50 = vsel %vm391_vm5, %v425_v15, %v426_v3 }
  0xf1   :  { %370 = vrot.lane.b32.xlu0 %v363_v31, %s1890_s27  ;;  %v1720_v31 = vld [vmem:[#allocation9 + $0x30] sm:$0xff]   ;;  %v611_v1 = vsel %vm280_vm4, %v606_v42, %v610_v54  ;;  %v429_v53 = vsel %vm391_vm5, %v423_v22, %v428_v11  ;;  %v657_v42 = vrot.slane %v644_v14, 2  ;;  %v661_v47 = vrot.slane %v646_v44, 2 }
  0xf2   :  { %1686 = vmatprep.subr.bf16.mxu0 %v1720_v31  ;;  %v1724_v22 = vld [vmem:[#allocation9 + $0x10] sm:$0xff]  }
  0xf3   :  { %368 = vrot.lane.b32.xlu1 %v361_v16, %s1890_s27  ;;  %1687 = vmatpush3.bf16.msra.mxu0 %v1720_v31  ;;  %v645_v16 = vmul.f32 %v2050_v0, %v2107_v23  ;;  %v662_v18 = vsel %vm391_vm5, %v657_v42, %v661_v47  ;;  %v682_v23 = vmul.f32 %v2073_v8, %v2172_v2  ;;  %v1631_v31 = vld [vmem:[#allocation7] ss:$0 sm:$0xff] }
  0xf4   :  { %1688 = vmatprep.subr.bf16.mxu0 %v1721_v19  ;;  %v202_v15 = vmul.f32 %v1631_v31, %v2004_v45 }
  0xf5   :  { %612 = vrot.lane.b32.xlu0 %v604_v12, %s1890_s27  ;;  %v642_v12 = vmul.f32 %v2050_v0, %v2027_v55  ;;  %v659_v36 = vrot.slane %v645_v16, 2  ;;  %v1723_v55 = vld [vmem:[#allocation9 + $0x18] sm:$0xff]   ;;  %v697_v54 = vrot.slane %v682_v23, 2 }
  0xf7   :  { %372 = vrot.lane.b32.xlu1 %v365_v58, %s1890_s27  ;;  %1689 = vmatpush3.bf16.msra.mxu0 %v1721_v19  ;;  %v431_v58 = vsel %vm391_vm5, %v426_v3, %v430_v35  ;;  %v656_v30 = vrot.slane %v642_v12, 2  ;;  %v660_v59 = vsel %vm391_vm5, %v654_v29, %v659_v36 }
  0xf8   :  { %1690 = vmatprep.subr.bf16.mxu0 %v1722_v39 }
  0xf9   :  { %616 = vrot.lane.b32.xlu0 %v609_v46, %s1890_s27  ;;  %v459_v46 = vmul.f32 %v2073_v8, %v2078_v10  ;;  %v460_v10 = vmul.f32 %v2073_v8, %v2100_v20  ;;  %v695_v20 = vrot.slane %v681_v33, 2  ;;  %v698_v8 = vsel %vm391_vm5, %v693_v4, %v697_v54 }
  0xfb   :  { %614 = vrot.lane.b32.xlu1 %v607_v21, %s1890_s27  ;;  %1691 = vmatpush3.bf16.msra.mxu0 %v1722_v39  ;;  %v473_v0 = vrot.slane %v459_v46, 2  ;;  %v1726_v21 = vld [vmem:[#allocation9] sm:$0xff]  }
  0xfc   :  { %1692 = vmatprep.subr.bf16.mxu0 %v1723_v55 }
  0xfd   :  { %432 = vrot.lane.b32.xlu0 %v424_v61, %s1889_s5  ;;  %v474_v29 = vsel %vm391_vm5, %v468_v43, %v473_v0  ;;  %v696_v43 = vsel %vm391_vm5, %v690_v9, %v695_v20 }
  0xff   :  { %618 = vrot.lane.b32.xlu1 %v611_v1, %s1890_s27  ;;  %1693 = vmatpush3.bf16.msra.mxu0 %v1723_v55  ;;  %v201_v1 = vmul.f32 %v1631_v31, %v1984_v28 }
 0x100   :  { %1694 = vmatprep.subr.bf16.mxu0 %v1724_v22 }
 0x101   :  { %436 = vrot.lane.b32.xlu0 %v429_v53, %s1889_s5 }
 0x103   :  { %434 = vrot.lane.b32.xlu1 %v427_v50, %s1889_s5  ;;  %1695 = vmatpush3.bf16.msra.mxu0 %v1724_v22 }
 0x104   :  { %1696 = vmatprep.subr.bf16.mxu0 %v1725_v48 }
 0x105   :  { %663 = vrot.lane.b32.xlu0 %v2137_v38, %s1889_s5  ;;  %v658_v38 = vsel %vm391_vm5, %v656_v30, %v657_v42 }
 0x107   :  { %438 = vrot.lane.b32.xlu1 %v431_v58, %s1889_s5  ;;  %1697 = vmatpush3.bf16.msra.mxu0 %v1725_v48  ;;  %v491_v58 = vmul.f32 %v1631_v31, %v1980_v26 }
 0x108   :  { %1698 = vmatprep.subr.bf16.mxu0 %v1726_v21 }
 0x109   :  { %667 = vrot.lane.b32.xlu0 %v660_v59, %s1889_s5 }
 0x10b   :  { %665 = vrot.lane.b32.xlu1 %v658_v38, %s1889_s5  ;;  %1699 = vmatpush3.bf16.msra.mxu0 %v1726_v21  ;;  %v492_v38 = vmul.f32 %v1631_v31, %v1996_v41 }
 0x10d   :  { %477 = vrot.lane.b32.xlu0 %v2157_v51, %s1890_s27  ;;  %v475_v51 = vrot.slane %v460_v10, 2 }
 0x10f   :  { %669 = vrot.lane.b32.xlu1 %v662_v18, %s1889_s5  ;;  %v476_v34 = vsel %vm391_vm5, %v471_v40, %v475_v51  ;;  %v1651_v40 = vld [vmem:[#allocation10 + $0x2] ss:$0 sm:$0xff] }
 0x111   :  { %481 = vrot.lane.b32.xlu0 %v474_v29, %s1890_s27 }
 0x113   :  { %479 = vrot.lane.b32.xlu1 %v2152_v49, %s1890_s27  ;;  %v1650_v49 = vld [vmem:[#allocation10 + $0x1] ss:$0 sm:$0xff] }
 0x115   :  { %699 = vrot.lane.b32.xlu0 %v2194_v17, %s1890_s27 }
 0x117   :  { %483 = vrot.lane.b32.xlu1 %v476_v34, %s1890_s27 }
 0x119   :  { %703 = vrot.lane.b32.xlu0 %v696_v43, %s1890_s27 }
 0x11b   :  { %701 = vrot.lane.b32.xlu1 %v2185_v24, %s1890_s27 }
 0x11d   :  { %942 = vrot.lane.b32.xlu0 %v1650_v49, %s1882_s30 }
 0x11f   :  { %705 = vrot.lane.b32.xlu1 %v698_v8, %s1890_s27 }
 0x121   :  { %1024 = vrot.lane.b32.xlu0 %v1653_v32, %s1882_s30 }
 0x123   :  { %973 = vrot.lane.b32.xlu1 %v1651_v40, %s1888_s2 }
 0x12f   :  { %v223_v62 = vpop.permute.xlu0 %222 }
 0x133   :  { %v227_v2 = vpop.permute.xlu0 %226 }
 0x135   :  { %v225_v9 = vpop.permute.xlu1 %224 }
 0x136   :  { %v231_v4 = vsel %vm230_vm6, %v223_v62, %v225_v9 }
 0x137   :  { %v504_v17 = vpop.permute.xlu0 %503  ;;  %v235_v3 = vadd.f32 %v231_v4, %v201_v1 }
 0x139   :  { %v229_v56 = vpop.permute.xlu1 %228 }
 0x13a   :  { %v232_v53 = vsel %vm230_vm6, %v227_v2, %v229_v56 }
 0x13b   :  { %v508_v24 = vpop.permute.xlu0 %507  ;;  %v236_v35 = vadd.f32 %v232_v53, %v202_v15 }
 0x13d   :  { %v506_v61 = vpop.permute.xlu1 %505 }
 0x13e   :  { %v511_v36 = vsel %vm230_vm6, %v504_v17, %v506_v61 }
 0x13f   :  { %v255_v11 = vpop.permute.xlu0 %254  ;;  %v515_v42 = vadd.f32 %v511_v36, %v491_v58 }
 0x141   :  { %v510_v52 = vpop.permute.xlu1 %509 }
 0x142   :  { %v512_v59 = vsel %vm230_vm6, %v508_v24, %v510_v52 }
 0x143   :  { %v259_v57 = vpop.permute.xlu0 %258  ;;  %v516_v47 = vadd.f32 %v512_v59, %v492_v38 }
 0x145   :  { %v257_v13 = vpop.permute.xlu1 %256 }
 0x146   :  { %v263_v16 = vsel %vm262_vm7, %v255_v11, %v257_v13 }
 0x147   :  { %v526_v19 = vpop.permute.xlu0 %525  ;;  %v267_v50 = vadd.f32 %v263_v16, %v235_v3 }
 0x149   :  { %v261_v12 = vpop.permute.xlu1 %260  ;;  %v288_v14 = vadd.f32 %v2210_v60, %v267_v50 }
 0x14a   :  { %v264_v39 = vsel %vm262_vm7, %v259_v57, %v261_v12 }
 0x14b   :  { %v530_v28 = vpop.permute.xlu0 %529  ;;  %v268_v30 = vadd.f32 %v264_v39, %v236_v35 }
 0x14d   :  { %v528_v44 = vpop.permute.xlu1 %527  ;;  %v289_v55 = vadd.f32 %v2213_v63, %v268_v30 }
 0x14e   :  { %v533_v45 = vsel %vm262_vm7, %v526_v19, %v528_v44 }
 0x14f   :  { %v322_v46 = vpop.permute.xlu0 %321  ;;  %v537_v60 = vadd.f32 %v533_v45, %v515_v42 }
 0x151   :  { %v532_v22 = vpop.permute.xlu1 %531  ;;  %v552_v0 = vadd.f32 %v2216_v5, %v537_v60 }
 0x152   :  { %v534_v18 = vsel %vm262_vm7, %v530_v28, %v532_v22 }
 0x153   :  { %v326_v26 = vpop.permute.xlu0 %325  ;;  %v538_v10 = vadd.f32 %v534_v18, %v516_v47 }
 0x155   :  { %v324_v29 = vpop.permute.xlu1 %323  ;;  %v553_v33 = vadd.f32 %v2219_v6, %v538_v10 }
 0x156   :  { %v329_v41 = vsel %vm230_vm6, %v322_v46, %v324_v29 }
 0x157   :  { %v577_v63 = vpop.permute.xlu0 %576  ;;  %v333_v43 = vadd.f32 %v329_v41, %v288_v14  ;;  %v1640_v41 = vld [vmem:[%s2836_s3] ss:$0 sm:$0xff] }
 0x159   :  { %v328_v48 = vpop.permute.xlu1 %327 }
 0x15a   :  { %v330_v5 = vsel %vm230_vm6, %v326_v26, %v328_v48 }
 0x15b   :  { %v581_v51 = vpop.permute.xlu0 %580  ;;  %v334_v40 = vadd.f32 %v330_v5, %v289_v55 }
 0x15d   :  { %v579_v20 = vpop.permute.xlu1 %578 }
 0x15e   :  { %v584_v2 = vsel %vm230_vm6, %v577_v63, %v579_v20  ;;  %v1654_v20 = vld [vmem:[#allocation10 + $0x5] ss:$0 sm:$0xff] }
 0x15f   :  { %v367_v21 = vpop.permute.xlu0 %366  ;;  %v588_v24 = vadd.f32 %v584_v2, %v552_v0  ;;  %1069 = vrot.lane.b32.xlu1 %v1654_v20, %s1888_s2 }
 0x161   :  { %v583_v34 = vpop.permute.xlu1 %582 }
 0x162   :  { %v585_v31 = vsel %vm230_vm6, %v581_v51, %v583_v34  ;;  %v1657_v34 = vld [vmem:[#allocation10 + $0x8] ss:$0 sm:$0xff] }
 0x163   :  { %v371_v23 = vpop.permute.xlu0 %370  ;;  %v589_v1 = vadd.f32 %v585_v31, %v553_v33  ;;  %1179 = vrot.lane.b32.xlu1 %v1657_v34, %s1888_s2 }
 0x165   :  { %v369_v49 = vpop.permute.xlu1 %368 }
 0x166   :  { %v374_v54 = vsel %vm262_vm7, %v367_v21, %v369_v49  ;;  %v1656_v21 = vld [vmem:[#allocation10 + $0x7] ss:$0 sm:$0xff] }
 0x167   :  { %v613_v32 = vpop.permute.xlu0 %612  ;;  %v378_v8 = vadd.f32 %v374_v54, %v333_v43  ;;  %1134 = vrot.lane.b32.xlu0 %v1656_v21, %s1882_s30 }
 0x169   :  { %v373_v62 = vpop.permute.xlu1 %372  ;;  %v399_v6 = vadd.f32 %v2226_v25, %v378_v8 }
 0x16a   :  { %v375_v9 = vsel %vm262_vm7, %v371_v23, %v373_v62 }
 0x16b   :  { %v617_v17 = vpop.permute.xlu0 %616  ;;  %v379_v56 = vadd.f32 %v375_v9, %v334_v40 }
 0x16d   :  { %v615_v61 = vpop.permute.xlu1 %614  ;;  %v400_v11 = vadd.f32 %v2232_v37, %v379_v56 }
 0x16e   :  { %v620_v52 = vsel %vm262_vm7, %v613_v32, %v615_v61 }
 0x16f   :  { %v433_v4 = vpop.permute.xlu0 %432  ;;  %v624_v57 = vadd.f32 %v620_v52, %v588_v24 }
 0x171   :  { %v619_v3 = vpop.permute.xlu1 %618  ;;  %v639_v25 = vadd.f32 %v2248_v27, %v624_v57 }
 0x172   :  { %v621_v13 = vsel %vm262_vm7, %v617_v17, %v619_v3 }
 0x173   :  { %v437_v53 = vpop.permute.xlu0 %436  ;;  %v625_v16 = vadd.f32 %v621_v13, %v589_v1 }
 0x175   :  { %v435_v19 = vpop.permute.xlu1 %434  ;;  %v640_v15 = vadd.f32 %v2251_v7, %v625_v16 }
 0x176   :  { %v440_v58 = vsel %vm230_vm6, %v433_v4, %v435_v19 }
 0x177   :  { %v664_v50 = vpop.permute.xlu0 %663  ;;  %v444_v42 = vadd.f32 %v440_v58, %v399_v6 }
 0x179   :  { %v439_v35 = vpop.permute.xlu1 %438 }
 0x17a   :  { %v441_v30 = vsel %vm230_vm6, %v437_v53, %v439_v35 }
 0x17b   :  { %v668_v37 = vpop.permute.xlu0 %667  ;;  %v445_v44 = vadd.f32 %v441_v30, %v400_v11 }
 0x17d   :  { %v666_v12 = vpop.permute.xlu1 %665 }
 0x17e   :  { %v671_v47 = vsel %vm230_vm6, %v664_v50, %v666_v12 }
 0x17f   :  { %v478_v14 = vpop.permute.xlu0 %477  ;;  %v675_v18 = vadd.f32 %v671_v47, %v639_v25 }
 0x181   :  { %v670_v36 = vpop.permute.xlu1 %669 }
 0x182   :  { %v672_v22 = vsel %vm230_vm6, %v668_v37, %v670_v36 }
 0x183   :  { %v482_v28 = vpop.permute.xlu0 %481  ;;  %v676_v26 = vadd.f32 %v672_v22, %v640_v15 }
 0x185   :  { %v480_v39 = vpop.permute.xlu1 %479 }
 0x186   :  { %v485_v27 = vsel %vm262_vm7, %v478_v14, %v480_v39 }
 0x187   :  { %v700_v7 = vpop.permute.xlu0 %699  ;;  %v489_v45 = vadd.f32 %v485_v27, %v444_v42 }
 0x189   :  { %v484_v55 = vpop.permute.xlu1 %483 }
 0x18a   :  { %v486_v59 = vsel %vm262_vm7, %v482_v28, %v484_v55 }
 0x18b   :  { %v490_v46 = vadd.f32 %v486_v59, %v445_v44  ;;  %v704_v29 = vpop.permute.xlu0 %703 }
 0x18d   :  { %v702_v38 = vpop.permute.xlu1 %701  ;;  %v713_v60 = vpack.c.bf16 %v490_v46, %v489_v45 }
 0x18e   :  { %v707_v0 = vsel %vm262_vm7, %v700_v7, %v702_v38 }
 0x18f   :  { %1700 = vmatprep.mubr.bf16.mxu0 %v713_v60  ;;  %v711_v63 = vadd.f32 %v707_v0, %v675_v18  ;;  %v2403_v17 = vpop.permute.xlu0 %942 }
 0x191   :  { %v706_v10 = vpop.permute.xlu1 %705 }
 0x192   :  { %v708_v33 = vsel %vm262_vm7, %v704_v29, %v706_v10 }
 0x193   :  { %v712_v48 = vadd.f32 %v708_v33, %v676_v26  ;;  %v2407_v24 = vpop.permute.xlu0 %1024 }
 0x195   :  { %v714_v51 = vpack.c.bf16 %v712_v48, %v711_v63  ;;  %v2405_v56 = vpop.permute.xlu1 %973 }
 0x197   :  { %1701 = vmatmul.mubr.bf16.vlgmr.msra.gmra.mxu0 %v714_v51 }
 0x1d1   :  { %v2409_v61 = vpop.permute.xlu1 %1069 }
 0x1d5   :  { %v2413_v31 = vpop.permute.xlu1 %1179 }
 0x1d9   :  { %v2411_v11 = vpop.permute.xlu0 %1134 }
 0x257   :  { %v1702_v23 = vpop.f32.mrf.mxu0 }
 0x258   :  { %v829_v43 = vadd.f32 %v1702_v23, %v1640_v41 }
 0x259   :  { %v820_v49 = vpop.f32.mrf.mxu0 }
 0x25a   :  { %v837_v5 = vmax.f32 %v829_v43, 0.0  ;;  %v821_v54 = vadd.f32 %v1640_v41, %v820_v49 }
 0x25b   :  { %v1703_v32 = vpop.f32.mrf.mxu0 }
 0x25c   :  { %v832_v8 = vadd.f32 %v1703_v32, %v1640_v41  ;;  %879 = vrot.lane.b32.xlu0 %v837_v5, %s1882_s30  ;;  %v835_v62 = vmax.f32 %v821_v54, 0.0 }
 0x25d   :  { %v823_v40 = vpop.f32.mrf.mxu0 }
 0x25e   :  { %v838_v6 = vmax.f32 %v832_v8, 0.0  ;;  %v824_v2 = vadd.f32 %v1640_v41, %v823_v40 }
 0x260   :  { %881 = vrot.lane.b32.xlu1 %v838_v6, %s1882_s30  ;;  %841 = vrot.lane.b32.xlu0 %v835_v62, %s1882_s30  ;;  %v836_v9 = vmax.f32 %v824_v2, 0.0 }
 0x264   :  { %843 = vrot.lane.b32.xlu1 %v836_v9, %s1882_s30 }
 0x2ce   :  { %v880_v52 = vpop.permute.xlu0 %879 }
 0x2cf   :  { %v885_v4 = vsel %vm112_vm0, 0.0, %v880_v52  ;;  %v887_v57 = vsel %vm112_vm0, %v880_v52, 0.0 }
 0x2d0   :  { %v893_v1 = vrot.slane %v885_v4, 7  ;;  %v894_v3 = vrot.slane %v887_v57, 7 }
 0x2d2   :  { %v2418_v25 = vsel %vm121_vm1, 0.0, %v893_v1  ;;  %v906_v13 = vsel %vm121_vm1, 0.0, %v894_v3  ;;  %v882_v53 = vpop.permute.xlu1 %881  ;;  %v842_v16 = vpop.permute.xlu0 %841 }
 0x2d3   :  { %910 = vst.msk [vmem:[#allocation3 + $0x38] sm:$0xff] %vm139_vm2, %v906_v13  ;;  %v886_v19 = vsel %vm112_vm0, 0.0, %v882_v53  ;;  %v888_v15 = vsel %vm112_vm0, %v882_v53, 0.0  ;;  %v847_v50 = vsel %vm112_vm0, 0.0, %v842_v16  ;;  %v849_v35 = vsel %vm112_vm0, %v842_v16, 0.0 }
 0x2d4   :  { %v895_v37 = vrot.slane %v886_v19, 7  ;;  %v897_v12 = vrot.slane %v888_v15, 7  ;;  %v855_v14 = vrot.slane %v847_v50, 7  ;;  %v856_v36 = vrot.slane %v849_v35, 7 }
 0x2d5   :  { %v1222_v39 = vmul.f32 %v2403_v17, %v2418_v25  ;;  %v1244_v38 = vmul.f32 %v2405_v56, %v2418_v25  ;;  %v1281_v23 = vmul.f32 %v2407_v24, %v2418_v25  ;;  %v1317_v49 = vmul.f32 %v2409_v61, %v2418_v25 }
 0x2d6   :  { %v2429_v28 = vsel %vm121_vm1, %v893_v1, %v895_v37  ;;  %v898_v58 = vsel %vm121_vm1, %v894_v3, %v897_v12  ;;  %v907_v30 = vsel %vm121_vm1, %v895_v37, 0.0  ;;  %v908_v27 = vsel %vm121_vm1, %v897_v12, 0.0  ;;  %v844_v42 = vpop.permute.xlu1 %843 }
 0x2d7   :  { %912 = vst.msk [vmem:[#allocation3 + $0x48] sm:$0xff] %vm139_vm2, %v898_v58  ;;  %913 = vst [vmem:[#allocation3 + $0x50] sm:$0x3] %v907_v30  ;;  %v2437_v44 = vsel %vm121_vm1, 0.0, %v855_v14  ;;  %v868_v55 = vsel %vm121_vm1, 0.0, %v856_v36  ;;  %v848_v59 = vsel %vm112_vm0, 0.0, %v844_v42  ;;  %1230 = vrot.lane.b32.xlu0 %v1222_v39, %s1889_s5  ;;  %v1224_v51 = vmul.f32 %v2403_v17, %v2429_v28 }
 0x2d8   :  { %914 = vst.msk [vmem:[#allocation3 + $0x58] sm:$0x3] %vm144_vm3, %v908_v27  ;;  %v850_v7 = vsel %vm112_vm0, %v844_v42, 0.0  ;;  %v857_v45 = vrot.slane %v848_v59, 7  ;;  %v945_v10 = vmul.f32 %v2403_v17, %v2437_v44  ;;  %v976_v63 = vmul.f32 %v2405_v56, %v2437_v44 }
 0x2d9   :  { %872 = vst.msk [vmem:[#allocation3 + $0x8] sm:$0xff] %vm139_vm2, %v868_v55  ;;  %v859_v46 = vrot.slane %v850_v7, 7  ;;  %v2483_v34 = vmul.f32 %v2407_v24, %v2429_v28  ;;  %v1246_v41 = vmul.f32 %v2405_v56, %v2429_v28  ;;  %v2496_v5 = vmul.f32 %v2409_v61, %v2429_v28 }
 0x2da   :  { %v2447_v60 = vsel %vm121_vm1, %v855_v14, %v857_v45  ;;  %v869_v22 = vsel %vm121_vm1, %v857_v45, 0.0  ;;  %v2452_v18 = vld [vmem:[#allocation3 + $0x38] sm:$0xff]  ;;  %v1293_v4 = vrot.slane %v1281_v23, 1  ;;  %v1329_v57 = vrot.slane %v1317_v49, 1 }
 0x2db   :  { %v860_v47 = vsel %vm121_vm1, %v856_v36, %v859_v46  ;;  %v870_v0 = vsel %vm121_vm1, %v859_v46, 0.0  ;;  %875 = vst [vmem:[#allocation3 + $0x20] sm:$0x3] %v869_v22  ;;  %v1223_v26 = vmul.f32 %v2403_v17, %v2452_v18  ;;  %1252 = vrot.lane.b32.xlu0 %v1244_v38, %s1890_s27  ;;  %v1245_v29 = vmul.f32 %v2405_v56, %v2452_v18 }
 0x2dc   :  { %874 = vst.msk [vmem:[#allocation3 + $0x18] sm:$0xff] %vm139_vm2, %v860_v47  ;;  %v1282_v32 = vmul.f32 %v2407_v24, %v2452_v18  ;;  %v1294_v8 = vrot.slane %v2483_v34, 1  ;;  %v947_v40 = vmul.f32 %v2403_v17, %v2447_v60  ;;  %v2519_v9 = vmul.f32 %v2409_v61, %v2452_v18 }
 0x2dd   :  { %876 = vst.msk [vmem:[#allocation3 + $0x28] sm:$0x3] %vm144_vm3, %v870_v0  ;;  %1232 = vrot.lane.b32.xlu1 %v1223_v26, %s1889_s5  ;;  %v978_v52 = vmul.f32 %v2405_v56, %v2447_v60  ;;  %v1330_v1 = vrot.slane %v2496_v5, 1  ;;  %v2529_v13 = vmul.f32 %v2411_v11, %v2418_v25  ;;  %v2533_v53 = vmul.f32 %v2411_v11, %v2429_v28 }
 0x2de   :  { %v2479_v21 = vld [vmem:[#allocation3 + $0x48] sm:$0xff]  ;;  %v2515_v2 = vld [vmem:[#allocation3 + $0x50] sm:$0xff]  ;;  %v1137_v16 = vmul.f32 %v2411_v11, %v2437_v44  ;;  %v1296_v15 = vrot.slane %v1282_v32, 1  ;;  %v1295_v50 = vsel %vm280_vm4, %v1293_v4, %v1294_v8  ;;  %v2544_v37 = vmul.f32 %v2411_v11, %v2447_v60 }
 0x2df   :  { %953 = vrot.lane.b32.xlu0 %v945_v10, %s1889_s5  ;;  %v2490_v43 = vld [vmem:[#allocation3 + $0x58] sm:$0xff]  ;;  %v1225_v54 = vmul.f32 %v2403_v17, %v2479_v21  ;;  %v2509_v62 = vmul.f32 %v2407_v24, %v2479_v21  ;;  %v1247_v3 = vmul.f32 %v2405_v56, %v2479_v21  ;;  %v1285_v35 = vmul.f32 %v2407_v24, %v2515_v2 }
 0x2e0   :  { %v2465_v33 = vld [vmem:[#allocation3 + $0x8] sm:$0xff]  ;;  %v2513_v6 = vmul.f32 %v2407_v24, %v2490_v43  ;;  %v2551_v36 = vmul.f32 %v2409_v61, %v2479_v21  ;;  %v1332_v39 = vrot.slane %v2519_v9, 1  ;;  %v1331_v58 = vsel %vm280_vm4, %v1329_v57, %v1330_v1 }
 0x2e1   :  { %1254 = vrot.lane.b32.xlu1 %v1245_v29, %s1890_s27  ;;  %v946_v48 = vmul.f32 %v2403_v17, %v2465_v33  ;;  %v977_v20 = vmul.f32 %v2405_v56, %v2465_v33  ;;  %v1297_v12 = vrot.slane %v2509_v62, 1  ;;  %v1321_v30 = vmul.f32 %v2409_v61, %v2515_v2 }
 0x2e2   :  { %v1301_v14 = vrot.slane %v2513_v6, 1  ;;  %v1149_v27 = vrot.slane %v1137_v16, 2  ;;  %v1150_v42 = vrot.slane %v2544_v37, 2  ;;  %v2563_v59 = vld [vmem:[#allocation3 + $0x20] sm:$0xff]  ;;  %v1183_v7 = vmul.f32 %v2413_v31, %v2465_v33 }
 0x2e3   :  { %984 = vrot.lane.b32.xlu0 %v976_v63, %s1890_s27  ;;  %v2537_v19 = vld [vmem:[#allocation3 + $0x18] sm:$0xff]  ;;  %v1182_v46 = vmul.f32 %v2413_v31, %v2437_v44  ;;  %v1299_v38 = vrot.slane %v1285_v35, 1  ;;  %v2575_v47 = vmul.f32 %v2409_v61, %v2490_v43  ;;  %v1184_v22 = vmul.f32 %v2413_v31, %v2447_v60 }
 0x2e4   :  { %v948_v55 = vmul.f32 %v2403_v17, %v2537_v19  ;;  %v2569_v45 = vmul.f32 %v2413_v31, %v2537_v19  ;;  %v2580_v17 = vsel %vm391_vm5, %v1149_v27, %v1150_v42  ;;  %v979_v0 = vmul.f32 %v2405_v56, %v2537_v19 }
 0x2e5   :  { %955 = vrot.lane.b32.xlu1 %v946_v48, %s1889_s5  ;;  %v1333_v26 = vrot.slane %v2551_v36, 1  ;;  %v1197_v10 = vrot.slane %v1183_v7, 2  ;;  %v1298_v63 = vsel %vm280_vm4, %v1296_v15, %v1297_v12  ;;  %v1194_v48 = vrot.slane %v1182_v46, 2 }
 0x2e6   :  { %v1198_v29 = vrot.slane %v2569_v45, 2  ;;  %v1335_v34 = vrot.slane %v1321_v30, 1  ;;  %v1405_v56 = vmul.f32 %v2413_v31, %v2452_v18  ;;  %v1407_v23 = vmul.f32 %v2413_v31, %v2479_v21 }
 0x2e7   :  { %1234 = vrot.lane.b32.xlu0 %v1224_v51, %s1889_s5  ;;  %v1195_v51 = vrot.slane %v1184_v22, 2  ;;  %v1404_v32 = vmul.f32 %v2413_v31, %v2418_v25  ;;  %v1300_v62 = vsel %vm280_vm4, %v1294_v8, %v1299_v38  ;;  %v1409_v4 = vmul.f32 %v2413_v31, %v2490_v43 }
 0x2e8   :  { %v1419_v6 = vrot.slane %v1405_v56, 2  ;;  %v1408_v15 = vmul.f32 %v2413_v31, %v2515_v2  ;;  %v1302_v35 = vsel %vm280_vm4, %v1297_v12, %v1301_v14  ;;  %v1381_v8 = vrot.slane %v2533_v53, 2  ;;  %v2714_v53 = vld [vmem:[#allocation3 + $0x28] sm:$0xff] }
 0x2e9   :  { %986 = vrot.lane.b32.xlu1 %v977_v20, %s1890_s27  ;;  %v1186_v20 = vmul.f32 %v2413_v31, %v2563_v59  ;;  %v2603_v49 = vsel %vm391_vm5, %v1194_v48, %v1195_v51  ;;  %v1424_v27 = vrot.slane %v1409_v4, 2  ;;  %v1336_v7 = vsel %vm280_vm4, %v1330_v1, %v1335_v34 }
 0x2ea   :  { %v1372_v46 = vmul.f32 %v2411_v11, %v2515_v2  ;;  %v1422_v12 = vrot.slane %v1408_v15, 2  ;;  %v1371_v15 = vmul.f32 %v2411_v11, %v2479_v21  ;;  %v1369_v9 = vmul.f32 %v2411_v11, %v2452_v18 }
 0x2eb   :  { %1256 = vrot.lane.b32.xlu0 %v1246_v41, %s1890_s27  ;;  %v2596_v41 = vsel %vm391_vm5, %v1197_v10, %v1198_v29  ;;  %v1031_v36 = vmul.f32 %v2407_v24, %v2563_v59  ;;  %v1187_v37 = vmul.f32 %v2413_v31, %v2714_v53 }
 0x2ed   :  { %1236 = vrot.lane.b32.xlu1 %v1225_v54, %s1889_s5  ;;  %v1200_v54 = vrot.slane %v1186_v20, 2 }
 0x2ef   :  { %957 = vrot.lane.b32.xlu0 %v947_v40, %s1889_s5  ;;  %v1406_v40 = vmul.f32 %v2413_v31, %v2429_v28  ;;  %v2614_v57 = vsel %vm391_vm5, %v1195_v51, %v1200_v54 }
 0x2f1   :  { %1258 = vrot.lane.b32.xlu1 %v1247_v3, %s1890_s27  ;;  %v1416_v3 = vrot.slane %v1404_v32, 2  ;;  %v1417_v16 = vrot.slane %v1406_v40, 2 }
 0x2f3   :  { %988 = vrot.lane.b32.xlu0 %v978_v52, %s1890_s27  ;;  %v1420_v52 = vrot.slane %v1407_v23, 2  ;;  %v2630_v38 = vsel %vm391_vm5, %v1416_v3, %v1417_v16  ;;  %v2640_v1 = vsel %vm391_vm5, %v1417_v16, %v1422_v12 }
 0x2f5   :  { %959 = vrot.lane.b32.xlu1 %v948_v55, %s1889_s5  ;;  %v2622_v30 = vsel %vm391_vm5, %v1419_v6, %v1420_v52  ;;  %v1655_v55 = vld [vmem:[#allocation10 + $0x6] ss:$0 sm:$0xff]  ;;  %v2634_v14 = vsel %vm391_vm5, %v1420_v52, %v1424_v27 }
 0x2f6   :  { %v1353_v10 = vmul.f32 %v1655_v55, %v2418_v25  ;;  %v1354_v48 = vmul.f32 %v1655_v55, %v2429_v28  ;;  %v1355_v51 = vmul.f32 %v1655_v55, %v2515_v2  ;;  %v1113_v16 = vmul.f32 %v1655_v55, %v2437_v44 }
 0x2f7   :  { %1303 = vrot.lane.b32.xlu0 %v1295_v50, %s1889_s5  ;;  %v1652_v50 = vld [vmem:[#allocation10 + $0x3] ss:$0 sm:$0xff]  ;;  %v1114_v27 = vmul.f32 %v1655_v55, %v2447_v60  ;;  %v1115_v12 = vmul.f32 %v1655_v55, %v2563_v59 }
 0x2f8   :  { %v1266_v22 = vmul.f32 %v1652_v50, %v2418_v25  ;;  %v1268_v5 = vmul.f32 %v1652_v50, %v2515_v2  ;;  %v1003_v56 = vmul.f32 %v1652_v50, %v2437_v44  ;;  %v1359_v23 = vrot.slane %v1353_v10, 2 }
 0x2f9   :  { %990 = vrot.lane.b32.xlu1 %v979_v0, %s1890_s27  ;;  %v1267_v0 = vmul.f32 %v1652_v50, %v2429_v28  ;;  %v1360_v54 = vrot.slane %v1354_v48, 2  ;;  %v1362_v32 = vrot.slane %v1355_v51, 2  ;;  %v1004_v40 = vmul.f32 %v1652_v50, %v2447_v60 }
 0x2fa   :  { %v1275_v34 = vrot.slane %v1268_v5, 1  ;;  %v1009_v2 = vrot.slane %v1003_v56, 1  ;;  %v1119_v5 = vrot.slane %v1113_v16, 2  ;;  %v1120_v55 = vrot.slane %v1114_v27, 2  ;;  %v1729_v56 = vld [vmem:[#allocation12 + $0x70] ss:$8 sps:$4 sm:$0xff]  }
 0x2fb   :  { %1307 = vrot.lane.b32.xlu0 %v1300_v62, %s1889_s5  ;;  %v1273_v20 = vrot.slane %v1267_v0, 1  ;;  %v2657_v52 = vsel %vm391_vm5, %v1359_v23, %v1360_v54  ;;  %v2660_v4 = vsel %vm391_vm5, %v1360_v54, %v1362_v32  ;;  %v1010_v3 = vrot.slane %v1004_v40, 1 }
 0x2fc   :  { %v1380_v0 = vrot.slane %v2529_v13, 2  ;;  %v1122_v10 = vrot.slane %v1115_v12, 2  ;;  %v1029_v13 = vmul.f32 %v2407_v24, %v2447_v60  ;;  %v2691_v48 = vsel %vm391_vm5, %v1119_v5, %v1120_v55  ;;  %v1735_v5 = vld [vmem:[#allocation12 + $0x50] ss:$8 sps:$4 sm:$0xff]  }
 0x2fd   :  { %1305 = vrot.lane.b32.xlu1 %v1298_v63, %s1889_s5  ;;  %v1272_v63 = vrot.slane %v1266_v22, 1  ;;  %v2653_v6 = vsel %vm280_vm4, %v1273_v20, %v1275_v34  ;;  %v1337_v22 = vrot.slane %v2575_v47, 1  ;;  %v1386_v47 = vrot.slane %v1372_v46, 2  ;;  %v1727_v34 = vld [vmem:[#allocation12 + $0x74] ss:$8 sps:$4 sm:$0xff]  }
 0x2fe   :  { %v2694_v51 = vsel %vm391_vm5, %v1120_v55, %v1122_v10  ;;  %v1027_v46 = vmul.f32 %v2407_v24, %v2437_v44  ;;  %v1383_v23 = vrot.slane %v1369_v9, 2  ;;  %v1040_v32 = vrot.slane %v1029_v13, 1  ;;  %1550 = vmatprep.subr.bf16.mxu1 %v1727_v34 }
 0x2ff   :  { %1339 = vrot.lane.b32.xlu0 %v1331_v58, %s1890_s27  ;;  %v2650_v62 = vsel %vm280_vm4, %v1272_v63, %v1273_v20  ;;  %v1005_v58 = vmul.f32 %v1652_v50, %v2563_v59  ;;  %v1334_v50 = vsel %vm280_vm4, %v1332_v39, %v1333_v26  ;;  %v1382_v39 = vsel %vm391_vm5, %v1380_v0, %v1381_v8  ;;  %v1733_v0 = vld [vmem:[#allocation12 + $0x54] ss:$8 sps:$4 sm:$0xff]  }
 0x300   :  { %v1338_v18 = vsel %vm280_vm4, %v1333_v26, %v1337_v22  ;;  %v1384_v63 = vrot.slane %v1371_v15, 2  ;;  %v1373_v20 = vmul.f32 %v2411_v11, %v2490_v43  ;;  %v1387_v54 = vsel %vm391_vm5, %v1381_v8, %v1386_v47  ;;  %1551 = vmatpush1.bf16.msra.mxu1 %v1729_v56  ;;  %v1730_v8 = vld [vmem:[#allocation12 + $0x64] ss:$8 sps:$4 sm:$0xff]  }
 0x301   :  { %1309 = vrot.lane.b32.xlu1 %v1302_v35, %s1889_s5  ;;  %v1012_v35 = vrot.slane %v1005_v58, 1  ;;  %v1030_v40 = vmul.f32 %v2407_v24, %v2537_v19  ;;  %v1732_v58 = vld [vmem:[#allocation12 + $0x60] ss:$8 sps:$4 sm:$0xff]   ;;  %v1045_v15 = vrot.slane %v1031_v36, 1  ;;  %1552 = vmatprep.subr.bf16.mxu1 %v1730_v8  ;;  %v1072_v22 = vmul.f32 %v2409_v61, %v2437_v44  ;;  %v1739_v36 = vld [vmem:[#allocation12 + $0x34] ss:$8 sps:$4 sm:$0xff]  }
 0x302   :  { %v1385_v43 = vsel %vm391_vm5, %v1383_v23, %v1384_v63  ;;  %v1388_v26 = vrot.slane %v1373_v20, 2  ;;  %v1075_v13 = vmul.f32 %v2409_v61, %v2537_v19  ;;  %v1738_v20 = vld [vmem:[#allocation12 + $0x40] ss:$8 sps:$4 sm:$0xff]  }
 0x303   :  { %1343 = vrot.lane.b32.xlu0 %v1336_v7, %s1890_s27  ;;  %v2676_v7 = vsel %vm280_vm4, %v1009_v2, %v1010_v3  ;;  %v2680_v21 = vsel %vm280_vm4, %v1010_v3, %v1012_v35  ;;  %v1039_v2 = vrot.slane %v1027_v46, 1  ;;  %v1028_v3 = vmul.f32 %v2407_v24, %v2465_v33 }
 0x304   :  { %v1074_v35 = vmul.f32 %v2409_v61, %v2447_v60  ;;  %v1389_v27 = vsel %vm391_vm5, %v1384_v63, %v1388_v26  ;;  %v1043_v12 = vrot.slane %v1030_v40, 1  ;;  %1553 = vmatpush1.bf16.msra.mxu1 %v1732_v58  ;;  %v1046_v10 = vsel %vm280_vm4, %v1040_v32, %v1045_v15  ;;  %v1736_v63 = vld [vmem:[#allocation12 + $0x44] ss:$8 sps:$4 sm:$0xff]  }
 0x305   :  { %1341 = vrot.lane.b32.xlu1 %v1334_v50, %s1890_s27  ;;  %v1041_v16 = vsel %vm280_vm4, %v1039_v2, %v1040_v32  ;;  %v1032_v50 = vmul.f32 %v2407_v24, %v2714_v53  ;;  %v1042_v55 = vrot.slane %v1028_v3, 1  ;;  %1554 = vmatprep.subr.bf16.mxu1 %v1733_v0  ;;  %v1073_v46 = vmul.f32 %v2409_v61, %v2465_v33  ;;  %v1742_v3 = vld [vmem:[#allocation12 + $0x24] ss:$8 sps:$4 sm:$0xff]  }
 0x306   :  { %v1085_v9 = vrot.slane %v1074_v35, 1  ;;  %v1077_v32 = vmul.f32 %v2409_v61, %v2714_v53  ;;  %v1141_v2 = vmul.f32 %v2411_v11, %v2563_v59  ;;  %v1138_v15 = vmul.f32 %v2411_v11, %v2465_v33 }
 0x307   :  { %1390 = vrot.lane.b32.xlu0 %v1382_v39, %s1889_s5  ;;  %v1076_v39 = vmul.f32 %v2409_v61, %v2563_v59  ;;  %v1044_v24 = vsel %vm280_vm4, %v1042_v55, %v1043_v12  ;;  %v1047_v47 = vrot.slane %v1032_v50, 1  ;;  %v1087_v26 = vrot.slane %v1073_v46, 1  ;;  %v1747_v50 = vld [vmem:[#allocation12 + $0x10] ss:$8 sps:$4 sm:$0xff]  }
 0x308   :  { %1555 = vmatpush1.bf16.msra.mxu1 %v1735_v5  ;;  %v1092_v58 = vrot.slane %v1077_v32, 1  ;;  %v1140_v61 = vmul.f32 %v2411_v11, %v2537_v19  ;;  %v1155_v35 = vrot.slane %v1141_v2, 2  ;;  %v1745_v19 = vld [vmem:[#allocation12 + $0x14] ss:$8 sps:$4 sm:$0xff]   ;;  %v1750_v5 = vld [vmem:[#allocation12] ss:$8 sps:$4 sm:$0xff]  }
 0x309   :  { %1345 = vrot.lane.b32.xlu1 %v1338_v18, %s1890_s27  ;;  %v1084_v18 = vrot.slane %v1072_v22, 1  ;;  %v1090_v56 = vrot.slane %v1076_v39, 1  ;;  %1556 = vmatprep.subr.bf16.mxu1 %v1736_v63  ;;  %v1048_v23 = vsel %vm280_vm4, %v1043_v12, %v1047_v47  ;;  %v1142_v12 = vmul.f32 %v2411_v11, %v2714_v53  ;;  %v1748_v11 = vld [vmem:[#allocation12 + $0x4] ss:$8 sps:$4 sm:$0xff]  }
 0x30a   :  { %v1152_v22 = vrot.slane %v1138_v15, 2  ;;  %v1156_v33 = vsel %vm391_vm5, %v1150_v42, %v1155_v35  ;;  %v1891_v42 = vmov 0  }
 0x30b   :  { %1394 = vrot.lane.b32.xlu0 %v1387_v54, %s1889_s5  ;;  %v1086_v34 = vsel %vm280_vm4, %v1084_v18, %v1085_v9  ;;  %v1088_v54 = vrot.slane %v1075_v13, 1  ;;  %v1091_v40 = vsel %vm280_vm4, %v1085_v9, %v1090_v56  ;;  %v1157_v0 = vrot.slane %v1142_v12, 2  ;;  %1582 = vmatprep.mubr.bf16.mxu1 %v1891_v42 }
 0x30c   :  { %1557 = vmatpush1.bf16.msra.mxu1 %v1738_v20 }
 0x30d   :  { %1392 = vrot.lane.b32.xlu1 %v1385_v43, %s1889_s5  ;;  %v1741_v43 = vld [vmem:[#allocation12 + $0x30] ss:$8 sps:$4 sm:$0xff]   ;;  %1558 = vmatprep.subr.bf16.mxu1 %v1739_v36  ;;  %v1089_v8 = vsel %vm280_vm4, %v1087_v26, %v1088_v54  ;;  %v1093_v59 = vsel %vm280_vm4, %v1088_v54, %v1092_v58 }
 0x30f   :  { %1049 = vrot.lane.b32.xlu0 %v1041_v16, %s1889_s5  ;;  %v1744_v16 = vld [vmem:[#allocation12 + $0x20] ss:$8 sps:$4 sm:$0xff]  }
 0x310   :  { %1559 = vmatpush1.bf16.msra.mxu1 %v1741_v43 }
 0x311   :  { %1396 = vrot.lane.b32.xlu1 %v1389_v27, %s1889_s5  ;;  %1560 = vmatprep.subr.bf16.mxu1 %v1742_v3  ;;  %v1153_v27 = vrot.slane %v1140_v61, 2 }
 0x313   :  { %1053 = vrot.lane.b32.xlu0 %v1046_v10, %s1889_s5  ;;  %v1158_v55 = vsel %vm391_vm5, %v1153_v27, %v1157_v0  ;;  %v1202_v10 = vrot.slane %v1187_v37, 2 }
 0x314   :  { %1561 = vmatpush1.bf16.msra.mxu1 %v1744_v16 }
 0x315   :  { %1051 = vrot.lane.b32.xlu1 %v1044_v24, %s1889_s5  ;;  %1562 = vmatprep.subr.bf16.mxu1 %v1745_v19  ;;  %v1203_v31 = vsel %vm391_vm5, %v1198_v29, %v1202_v10 }
 0x317   :  { %1094 = vrot.lane.b32.xlu0 %v1086_v34, %s1890_s27 }
 0x318   :  { %1563 = vmatpush1.bf16.msra.mxu1 %v1747_v50 }
 0x319   :  { %1055 = vrot.lane.b32.xlu1 %v1048_v23, %s1889_s5  ;;  %1564 = vmatprep.subr.bf16.mxu1 %v1748_v11 }
 0x31b   :  { %1098 = vrot.lane.b32.xlu0 %v1091_v40, %s1890_s27 }
 0x31c   :  { %1565 = vmatpush1.bf16.msra.mxu1 %v1750_v5 }
 0x31d   :  { %1096 = vrot.lane.b32.xlu1 %v1089_v8, %s1890_s27 }
 0x31f   :  { %1159 = vrot.lane.b32.xlu0 %v2580_v17, %s1889_s5  ;;  %v1154_v17 = vsel %vm391_vm5, %v1152_v22, %v1153_v27 }
 0x321   :  { %1100 = vrot.lane.b32.xlu1 %v1093_v59, %s1890_s27 }
 0x323   :  { %1163 = vrot.lane.b32.xlu0 %v1156_v33, %s1889_s5 }
 0x325   :  { %1161 = vrot.lane.b32.xlu1 %v1154_v17, %s1889_s5 }
 0x327   :  { %1204 = vrot.lane.b32.xlu0 %v2603_v49, %s1890_s27 }
 0x329   :  { %1165 = vrot.lane.b32.xlu1 %v1158_v55, %s1889_s5 }
 0x32b   :  { %1208 = vrot.lane.b32.xlu0 %v2614_v57, %s1890_s27 }
 0x32d   :  { %1206 = vrot.lane.b32.xlu1 %v2596_v41, %s1890_s27  ;;  %v1649_v41 = vld [vmem:[#allocation10] ss:$0 sm:$0xff] }
 0x32e   :  { %v932_v18 = vmul.f32 %v1649_v41, %v2437_v44  ;;  %v1219_v36 = vmul.f32 %v1649_v41, %v2429_v28  ;;  %v933_v3 = vmul.f32 %v1649_v41, %v2447_v60 }
 0x32f   :  { %1426 = vrot.lane.b32.xlu0 %v2630_v38, %s1890_s27  ;;  %v1218_v38 = vmul.f32 %v1649_v41, %v2418_v25 }
 0x331   :  { %1210 = vrot.lane.b32.xlu1 %v1203_v31, %s1890_s27 }
 0x333   :  { %1430 = vrot.lane.b32.xlu0 %v2640_v1, %s1890_s27 }
 0x335   :  { %1428 = vrot.lane.b32.xlu1 %v2622_v30, %s1890_s27 }
 0x339   :  { %1432 = vrot.lane.b32.xlu1 %v2634_v14, %s1890_s27 }
 0x349   :  { %v1231_v49 = vpop.permute.xlu0 %1230 }
 0x34d   :  { %v1253_v57 = vpop.permute.xlu0 %1252 }
 0x34f   :  { %v1233_v53 = vpop.permute.xlu1 %1232 }
 0x350   :  { %v1238_v45 = vsel %vm230_vm6, %v1231_v49, %v1233_v53 }
 0x351   :  { %v1242_v29 = vadd.f32 %v1238_v45, %v1218_v38  ;;  %v954_v9 = vpop.permute.xlu0 %953 }
 0x353   :  { %v1255_v39 = vpop.permute.xlu1 %1254 }
 0x354   :  { %v1260_v24 = vsel %vm262_vm7, %v1253_v57, %v1255_v39 }
 0x355   :  { %v1264_v1 = vadd.f32 %v1260_v24, %v1242_v29  ;;  %v985_v47 = vpop.permute.xlu0 %984 }
 0x357   :  { %v956_v13 = vpop.permute.xlu1 %955  ;;  %v1279_v30 = vadd.f32 %v2650_v62, %v1264_v1 }
 0x358   :  { %v961_v14 = vsel %vm230_vm6, %v954_v9, %v956_v13 }
 0x359   :  { %v1235_v63 = vpop.permute.xlu0 %1234  ;;  %v965_v20 = vadd.f32 %v961_v14, %v932_v18 }
 0x35b   :  { %v987_v46 = vpop.permute.xlu1 %986 }
 0x35c   :  { %v992_v25 = vsel %vm262_vm7, %v985_v47, %v987_v46 }
 0x35d   :  { %v996_v34 = vadd.f32 %v992_v25, %v965_v20  ;;  %v1257_v56 = vpop.permute.xlu0 %1256 }
 0x35f   :  { %v1237_v23 = vpop.permute.xlu1 %1236  ;;  %v1016_v54 = vadd.f32 %v2676_v7, %v996_v34 }
 0x360   :  { %v1239_v32 = vsel %vm230_vm6, %v1235_v63, %v1237_v23 }
 0x361   :  { %v958_v43 = vpop.permute.xlu0 %957  ;;  %v1243_v62 = vadd.f32 %v1239_v32, %v1219_v36 }
 0x363   :  { %v1259_v26 = vpop.permute.xlu1 %1258 }
 0x364   :  { %v1261_v40 = vsel %vm262_vm7, %v1257_v56, %v1259_v26 }
 0x365   :  { %v1265_v44 = vadd.f32 %v1261_v40, %v1243_v62  ;;  %v989_v2 = vpop.permute.xlu0 %988 }
 0x367   :  { %v960_v8 = vpop.permute.xlu1 %959  ;;  %v1280_v58 = vadd.f32 %v2653_v6, %v1265_v44 }
 0x368   :  { %v962_v61 = vsel %vm230_vm6, %v958_v43, %v960_v8 }
 0x369   :  { %v1304_v16 = vpop.permute.xlu0 %1303  ;;  %v966_v7 = vadd.f32 %v962_v61, %v933_v3 }
 0x36b   :  { %v991_v15 = vpop.permute.xlu1 %990 }
 0x36c   :  { %v993_v35 = vsel %vm262_vm7, %v989_v2, %v991_v15 }
 0x36d   :  { %v997_v28 = vadd.f32 %v993_v35, %v966_v7  ;;  %v1308_v59 = vpop.permute.xlu0 %1307 }
 0x36f   :  { %v1306_v27 = vpop.permute.xlu1 %1305  ;;  %v1017_v12 = vadd.f32 %v2680_v21, %v997_v28 }
 0x370   :  { %v1311_v22 = vsel %vm230_vm6, %v1304_v16, %v1306_v27 }
 0x371   :  { %v1340_v19 = vpop.permute.xlu0 %1339  ;;  %v1315_v6 = vadd.f32 %v1311_v22, %v1279_v30 }
 0x373   :  { %v1310_v50 = vpop.permute.xlu1 %1309 }
 0x374   :  { %v1312_v0 = vsel %vm230_vm6, %v1308_v59, %v1310_v50 }
 0x375   :  { %v1344_v33 = vpop.permute.xlu0 %1343  ;;  %v1316_v55 = vadd.f32 %v1312_v0, %v1280_v58 }
 0x377   :  { %v1342_v17 = vpop.permute.xlu1 %1341 }
 0x378   :  { %v1347_v60 = vsel %vm262_vm7, %v1340_v19, %v1342_v17 }
 0x379   :  { %v1351_v11 = vadd.f32 %v1347_v60, %v1315_v6  ;;  %v1391_v5 = vpop.permute.xlu0 %1390  ;;  %v1460_v6 = vlaneseq  ;;  %v1458_v60 = vld [vmem:[%s2839_s6] sm:$0x3]  ;;  %s1892_s6 = smov [#allocation13]  }
 0x37a   :  { %s1617_s8 = sshll.u32 %s1892_s6, 4  ;;  %s1618_s8 = int_to_ptr.vmem [resolvable:$true] %s1617_s8 }
 0x37b   :  { %v1346_v37 = vpop.permute.xlu1 %1345  ;;  %v1366_v10 = vadd.f32 %v2657_v52, %v1351_v11  ;;  %v1461_v17 = vshrl.u32 %v1460_v6, 7  ;;  %s1851_s9 = scalar_lea.vmem %s1618_s8, 1024  ;;  %p1856_p12 = scmp.lt.s32.totalorder %s1618_s8, %s1618_s8 }
 0x37c   :  { %v1348_v31 = vsel %vm262_vm7, %v1344_v33, %v1346_v37  ;;  %p1852_p11 = scmp.ne.s32.totalorder %s1618_s8, %s1851_s9  ;;  %p1857_p13 = scmp.lt.s32.totalorder %s1851_s9, %s1851_s9 }
 0x37d   :  { %v1352_v21 = vadd.f32 %v1348_v31, %v1316_v55  ;;  %v1395_v49 = vpop.permute.xlu0 %1394  ;;  %v1462_v0 = vsub.s32 0, %v1461_v17  ;;  %v1466_v11 = vsub.s32 1, %v1461_v17 }
 0x37e   :  { %p1858_p0 = por %p1857_p13, %p1856_p12 }
 0x37f   :  { %v1393_v41 = vpop.permute.xlu1 %1392  ;;  %v1367_v57 = vadd.f32 %v2660_v4, %v1352_v21 }
 0x380   :  { %v1398_v7 = vsel %vm230_vm6, %v1391_v5, %v1393_v41  ;;  %v1463_v5 = vrot.slane %v1458_v60, %v1462_v0  ;;  %p1859_p1 = pnand %p1858_p0, %p1852_p11 }
 0x381   :  { %v1050_v53 = vpop.permute.xlu0 %1049  ;;  %v1402_v28 = vadd.f32 %v1398_v7, %v1366_v10 }
 0x383   :  { %v1397_v38 = vpop.permute.xlu1 %1396 }
 0x384   :  { %v1399_v15 = vsel %vm230_vm6, %v1395_v49, %v1397_v38 }
 0x385   :  { %v1054_v45 = vpop.permute.xlu0 %1053  ;;  %v1403_v59 = vadd.f32 %v1399_v15, %v1367_v57 }
 0x387   :  { %v1052_v29 = vpop.permute.xlu1 %1051 }
 0x388   :  { %v1057_v24 = vsel %vm230_vm6, %v1050_v53, %v1052_v29 }
 0x389   :  { %v1095_v9 = vpop.permute.xlu0 %1094  ;;  %v1061_v47 = vadd.f32 %v1057_v24, %v1016_v54 }
 0x38b   :  { %v1056_v39 = vpop.permute.xlu1 %1055 }
 0x38c   :  { %v1058_v52 = vsel %vm230_vm6, %v1054_v45, %v1056_v39 }
 0x38d   :  { %v1099_v1 = vpop.permute.xlu0 %1098  ;;  %v1062_v63 = vadd.f32 %v1058_v52, %v1017_v12 }
 0x38f   :  { %v1097_v13 = vpop.permute.xlu1 %1096 }
 0x390   :  { %v1102_v30 = vsel %vm262_vm7, %v1095_v9, %v1097_v13 }
 0x391   :  { %v1106_v14 = vadd.f32 %v1102_v30, %v1061_v47  ;;  %v1160_v18 = vpop.permute.xlu0 %1159 }
 0x393   :  { %v1101_v20 = vpop.permute.xlu1 %1100  ;;  %v1126_v4 = vadd.f32 %v2691_v48, %v1106_v14 }
 0x394   :  { %v1103_v46 = vsel %vm262_vm7, %v1099_v1, %v1101_v20 }
 0x395   :  { %v1107_v25 = vadd.f32 %v1103_v46, %v1062_v63  ;;  %v1164_v34 = vpop.permute.xlu0 %1163 }
 0x397   :  { %v1162_v56 = vpop.permute.xlu1 %1161  ;;  %v1127_v23 = vadd.f32 %v2694_v51, %v1107_v25 }
 0x398   :  { %v1167_v62 = vsel %vm230_vm6, %v1160_v18, %v1162_v56 }
 0x399   :  { %v1205_v32 = vpop.permute.xlu0 %1204  ;;  %v1171_v44 = vadd.f32 %v1167_v62, %v1126_v4 }
 0x39b   :  { %v1166_v54 = vpop.permute.xlu1 %1165 }
 0x39c   :  { %v1168_v26 = vsel %vm230_vm6, %v1164_v34, %v1166_v54 }
 0x39d   :  { %v1209_v43 = vpop.permute.xlu0 %1208  ;;  %v1172_v2 = vadd.f32 %v1168_v26, %v1127_v23 }
 0x39f   :  { %v1207_v36 = vpop.permute.xlu1 %1206 }
 0x3a0   :  { %v1212_v40 = vsel %vm262_vm7, %v1205_v32, %v1207_v36 }
 0x3a1   :  { %v1216_v58 = vadd.f32 %v1212_v40, %v1171_v44  ;;  %v1427_v3 = vpop.permute.xlu0 %1426 }
 0x3a3   :  { %v1211_v48 = vpop.permute.xlu1 %1210 }
 0x3a4   :  { %v1213_v8 = vsel %vm262_vm7, %v1209_v43, %v1211_v48 }
 0x3a5   :  { %v1217_v61 = vadd.f32 %v1213_v8, %v1172_v2  ;;  %v1431_v12 = vpop.permute.xlu0 %1430 }
 0x3a7   :  { %v1429_v16 = vpop.permute.xlu1 %1428  ;;  %v1440_v51 = vpack.c.bf16 %v1217_v61, %v1216_v58 }
 0x3a8   :  { %v1434_v35 = vsel %vm262_vm7, %v1427_v3, %v1429_v16 }
 0x3a9   :  { %1583 = vmatmul.mubr.bf16.vlgmr.msra.gmra.mxu1 %v1440_v51  ;;  %v1438_v50 = vadd.f32 %v1434_v35, %v1402_v28 }
 0x3aa   :  { %1592 = vmatprep.mubr.bf16.mxu1 %v1891_v42  ;;  %v1467_v42 = vrot.slane %v1458_v60, %v1466_v11 }
 0x3ab   :  { %v1433_v27 = vpop.permute.xlu1 %1432 }
 0x3ac   :  { %v1435_v19 = vsel %vm262_vm7, %v1431_v12, %v1433_v27 }
 0x3ad   :  { %v1439_v22 = vadd.f32 %v1435_v19, %v1403_v59 }
 0x3af   :  { %v1441_v33 = vpack.c.bf16 %v1439_v22, %v1438_v50 }
 0x3b1   :  { %1593 = vmatmul.mubr.bf16.gmra.mxu1 %v1441_v33 }
 0x469   :  { %v1584_v55 = vpop.f32.mrf.mxu1 }
 0x46a   :  { %v1585_v37 = vadd.f32 %v1584_v55, %v1463_v5 }
 0x46b   :  { %v1586_v10 = vpop.f32.mrf.mxu1 }
 0x46c   :  { %1603 = vst [vmem:[#allocation13] sm:$0xff] %v1585_v37  ;;  %v1587_v31 = vadd.f32 %v1586_v10, %v1467_v42 }
 0x46d   :  { %v1588_v21 = vpop.f32.mrf.mxu1 }
 0x46e   :  { %1604 = vst [vmem:[#allocation13 + $0x8] sm:$0xff] %v1587_v31  ;;  %v1589_v49 = vadd.f32 %v1588_v21, %v1463_v5 }
 0x46f   :  { %v1590_v41 = vpop.f32.mrf.mxu1 }
 0x470   :  { %1605 = vst [vmem:[#allocation13 + $0x10] sm:$0xff] %v1589_v49  ;;  %v1591_v57 = vadd.f32 %v1590_v41, %v1467_v42 }
 0x471   :  { %v1594_v53 = vpop.f32.mrf.mxu1 }
 0x472   :  { %1606 = vst [vmem:[#allocation13 + $0x18] sm:$0xff] %v1591_v57  ;;  %v1595_v38 = vadd.f32 %v1594_v53, %v1463_v5 }
 0x473   :  { %v1596_v45 = vpop.f32.mrf.mxu1 }
 0x474   :  { %1608 = vst [vmem:[#allocation13 + $0x20] sm:$0xff] %v1595_v38  ;;  %v1597_v29 = vadd.f32 %v1596_v45, %v1467_v42 }
 0x475   :  { %v1598_v9 = vpop.f32.mrf.mxu1 }
 0x476   :  { %1609 = vst [vmem:[#allocation13 + $0x28] sm:$0xff] %v1597_v29  ;;  %v1599_v39 = vadd.f32 %v1598_v9, %v1463_v5 }
 0x477   :  { %v1600_v24 = vpop.f32.mrf.mxu1 }
 0x478   :  { %1610 = vst [vmem:[#allocation13 + $0x30] sm:$0xff] %v1599_v39  ;;  %v1601_v1 = vadd.f32 %v1600_v24, %v1467_v42 }
 0x47a   :  { %1611 = vst [vmem:[#allocation13 + $0x38] sm:$0xff] %v1601_v1 }
 0x47b   :  { %1862 = shalt.err (!%p1859_p1)
}
 0x47c   :  { %s1893_s10 = smov 256  }
 0x47d   :  { %1623 = dma.vmem_to_hbm [thread:$0]  %s1618_s8, 1024, %s2840_s7, [#allocation6], %s1893_s10, %s1893_s10, %s1888_s2  }
 0x47e   :  { %1877 = dma.done.wait [#allocation6], 1024  }
 0x47f   :  { %1878 = vsyncadd [#allocation6], 4294966272 }
 0x480   :  { %1627 = vsyncpa [#allocation5], 1 }
 0x481   :  { %1628 = vsyncpa [#allocation8], 1 }
 0x482   :  { %1629 = vsyncpa [#allocation11], 1 }
 0x483   :  { %1630 = vsyncpa [#allocation6], 1 }

</bundles_post_ra>
